<compile_context>
chip_gen: v7x
topology: tpu7x:2x2x1
jax: 0.10.0
libtpu: 0.0.40
codegen_flags: <defaults>
</compile_context>

<pallas_src>
import functools

import numpy as np
import jax
import jax.numpy as jnp
from jax import lax
from jax.experimental import pallas as pl
from jax.experimental.pallas import tpu as pltpu


def _round_up(x, m):
    return (x + m - 1) // m * m


def _bilstm_kernel(T, B, H, GW,
                   x_ref, lens_ref, wif_ref, wib_ref, b_ref, whh_ref,
                   out_ref,
                   ginf_ref, ginb_ref):
    """Whole (small) problem resident in VMEM; single pallas_call invocation.

    x_ref    : (T*B, D)    f32  time-major flattened input (row = t*B + b)
    lens_ref : (B, 1)      f32  per-sequence valid lengths (padded rows = 0)
    wif_ref  : (D, 4*GW)   f32  input weights, fwd gate columns (others zero)
    wib_ref  : (D, 4*GW)   f32  input weights, bwd gate columns (others zero)
    b_ref    : (1, 4*GW)   f32  combined biases (b_ih + b_hh), grouped layout
    whh_ref  : (GW, 4*GW)  f32  fused recurrent weights for state [h_f|h_b|pad]
    out_ref  : (T*B, GW)   f32  per-step hidden [h_fwd(t=s) | h_bwd(t=T-1-s) | 0]
    ginf/ginb: (T*B, 4*GW) f32  VMEM scratch for the hoisted input projections
    Gate column layout: 4 groups of GW(=128) lanes, group g = gate (i,f,g,o);
    within a group: [0:H)=fwd, [H:2H)=bwd, [2H:GW)=zero pad.
    """
    f32 = jnp.float32

    # ---- preamble: input projections hoisted out of the recurrence --------
    # Both directions project the ORIGINAL input; the backward direction is
    # realized by static reversed row indexing in the unrolled loop below.
    x = x_ref[...]                                                       # (T*B, D)
    ginf_ref[...] = (jnp.dot(x, wif_ref[...], preferred_element_type=f32)
                     + b_ref[...])                                       # (T*B, 4GW)
    ginb_ref[...] = jnp.dot(x, wib_ref[...], preferred_element_type=f32)

    # ---- in-kernel mask ingredients (hoisted, lane-constant) ---------------
    lens_col = lens_ref[...]                                             # (B, 1)
    lane = lax.broadcasted_iota(jnp.int32, (1, GW), 1)                   # (1, GW)
    fwd_lanes = lane < H
    bwd_lanes = (lane >= H) & (lane < 2 * H)

    h = jnp.zeros((B, GW), f32)          # [h_fwd | h_bwd | zero pad], full vreg lanes
    c = jnp.zeros((B, GW), f32)

    # ---- fully unrolled recurrence (T static). Step s advances the forward
    # direction at time t = s and the backward direction at time t = T-1-s,
    # fused into one recurrent matmul + one gate-activation pass.
    for s in range(T):
        rb = T - 1 - s
        g_in = ginf_ref[pl.ds(s * B, B), :] + ginb_ref[pl.ds(rb * B, B), :]   # (B, 4GW)
        gates = g_in + jnp.dot(h, whh_ref[...], preferred_element_type=f32)

        # vreg-aligned gate slices (each GW = 128 lanes wide).
        i_g = jax.nn.sigmoid(gates[:, 0 * GW:1 * GW])
        f_g = jax.nn.sigmoid(gates[:, 1 * GW:2 * GW])
        g_g = jnp.tanh(gates[:, 2 * GW:3 * GW])
        o_g = jax.nn.sigmoid(gates[:, 3 * GW:4 * GW])

        c_new = f_g * c + i_g * g_g
        h_new = o_g * jnp.tanh(c_new)

        # packed-sequence masking, built in-kernel from lens:
        #   fwd valid iff s < len;  bwd valid iff (T-1-s) < len; pad lanes never.
        fwd_m = lens_col > float(s)                       # (B, 1) bool
        bwd_m = lens_col > float(rb)                      # (B, 1) bool
        m = (fwd_lanes & fwd_m) | (bwd_lanes & bwd_m)     # (B, GW) bool

        h = jnp.where(m, h_new, h)
        c = jnp.where(m, c_new, c)
        # one unmasked full-vreg (8,128) store per step
        out_ref[pl.ds(s * B, B), :] = jnp.where(m, h_new, jnp.zeros_like(h_new))


def prepare_lstm_params(params):
    """One-time weight prep (hoisted out of the per-call path).

    Returns (weights_dict, H, GW) where weights use the grouped, lane-padded
    layout consumed by the kernel. Do this once at parameter-load time."""
    H = int(np.asarray(params["w_hh_f"]).shape[1])
    GW = max(128, _round_up(2 * H, 128))     # lane width of each gate group

    def place(w_t, direction):
        # w_t: (K, 4H) in PyTorch gate order (i,f,g,o). Scatter each H-wide gate
        # block into its lane-aligned group; other direction + pad lanes = 0
        # (free MACs — the MXU is underfilled at this size anyway).
        w_t = np.asarray(w_t, np.float32)
        K = w_t.shape[0]
        out = np.zeros((K, 4 * GW), np.float32)
        off = 0 if direction == 0 else H
        for g in range(4):
            out[:, g * GW + off: g * GW + off + H] = w_t[:, g * H:(g + 1) * H]
        return out

    w_if = place(np.asarray(params["w_ih_f"], np.float32).T, 0)          # (D, 4GW)
    w_ib = place(np.asarray(params["w_ih_b"], np.float32).T, 1)          # (D, 4GW)
    bias = (place(np.asarray(params["b_ih_f"] + params["b_hh_f"],
                             np.float32).reshape(1, 4 * H), 0)
            + place(np.asarray(params["b_ih_b"] + params["b_hh_b"],
                               np.float32).reshape(1, 4 * H), 1))        # (1, 4GW)
    w_hh = np.zeros((GW, 4 * GW), np.float32)                            # (GW, 4GW)
    w_hh[0:H] = place(np.asarray(params["w_hh_f"], np.float32).T, 0)
    w_hh[H:2 * H] = place(np.asarray(params["w_hh_b"], np.float32).T, 1)

    weights = {"w_if": jnp.asarray(w_if), "w_ib": jnp.asarray(w_ib),
               "bias": jnp.asarray(bias), "w_hh": jnp.asarray(w_hh)}
    return weights, H, GW


@functools.partial(jax.jit, static_argnames=("hidden_dim", "group_width", "max_len"))
def lstm_relation_forward(x, lens, weights, hidden_dim, group_width, max_len=None):
    """x: (B, T, D) float32 batch_first; lens: (B,) int sorted descending.

    weights/hidden_dim/group_width come from prepare_lstm_params (one-time).
    Returns (B, T, 2H) (or (B, max_len, 2H) for a *static* max_len; pad_packed
    semantics require max_len == int(lens[0]) — smaller values truncate)."""
    B, T, D = x.shape
    H, GW = hidden_dim, group_width

    # ---- pad batch to a full sublane group (perf: fill >= 8 sublanes) -----
    # (Callers with many independent sequences should batch them here; B up to
    #  ~128 is essentially free wall-clock.)
    B_pad = _round_up(max(B, 8), 8)
    if B_pad != B:
        x = jnp.pad(x, ((0, B_pad - B), (0, 0), (0, 0)))
        lens = jnp.pad(lens, (0, B_pad - B))        # len 0 -> rows stay zero

    # ---- inputs: time-major, flattened (row = t*B + b); lens as a column ---
    x_tm = jnp.transpose(x, (1, 0, 2)).reshape(T * B_pad, D)
    lens_col = lens.astype(jnp.float32).reshape(B_pad, 1)

    vmem = lambda: pl.BlockSpec(memory_space=pltpu.MemorySpace.VMEM)
    kernel = functools.partial(_bilstm_kernel, T, B_pad, H, GW)
    out = pl.pallas_call(
        kernel,
        out_shape=jax.ShapeDtypeStruct((T * B_pad, GW), jnp.float32),
        in_specs=[vmem() for _ in range(6)],
        out_specs=vmem(),
        scratch_shapes=[pltpu.VMEM((T * B_pad, 4 * GW), jnp.float32),
                        pltpu.VMEM((T * B_pad, 4 * GW), jnp.float32)],
    )(x_tm, lens_col, weights["w_if"], weights["w_ib"], weights["bias"],
      weights["w_hh"])

    # ---- epilogue (all inside jit; no host sync) ---------------------------
    out3 = out.reshape(T, B_pad, GW)
    h_f = out3[:, :, :H]                      # fwd hidden, time-major
    h_b = out3[::-1, :, H:2 * H]              # bwd hidden, back to time order
    res = jnp.transpose(jnp.concatenate([h_f, h_b], axis=-1), (1, 0, 2))   # (Bp,T,2H)
    res = res[:B]
    if max_len is not None:                   # static slice only
        res = res[:, :max_len, :]
    return res


def np_bilstm_ref(x, lens, params):
    """Pure-numpy reference with PyTorch LSTM packed-sequence semantics."""
    x = np.asarray(x, np.float32)
    B, T, D = x.shape
    H = np.asarray(params["w_hh_f"]).shape[1]
    out = np.zeros((B, T, 2 * H), np.float32)

    def sigmoid(z):
        return 1.0 / (1.0 + np.exp(-z))

    def run_dir(b, time_iter, wi, wh, bi, bh, col):
        h = np.zeros(H, np.float32)
        c = np.zeros(H, np.float32)
        for t in time_iter:
            g = x[b, t] @ wi.T + h @ wh.T + bi + bh
            i = sigmoid(g[:H])
            f = sigmoid(g[H:2 * H])
            gg = np.tanh(g[2 * H:3 * H])
            o = sigmoid(g[3 * H:])
            c = f * c + i * gg
            h = o * np.tanh(c)
            out[b, t, col:col + H] = h

    for b in range(B):
        L = int(lens[b])
        run_dir(b, range(L),
                np.asarray(params["w_ih_f"]), np.asarray(params["w_hh_f"]),
                np.asarray(params["b_ih_f"]), np.asarray(params["b_hh_f"]), 0)
        run_dir(b, range(L - 1, -1, -1),
                np.asarray(params["w_ih_b"]), np.asarray(params["w_hh_b"]),
                np.asarray(params["b_ih_b"]), np.asarray(params["b_hh_b"]), H)
    return out[:, :int(lens[0]), :]


if __name__ == "__main__":
    # args: dim_w=24, dim_pos=8 -> in_dim D=32 ; dim_bilstm_hidden H=32
    B, T = 2, 8
    DIM_W, DIM_POS = 24, 8
    D = DIM_W + DIM_POS
    H = 32

    key = jax.random.PRNGKey(0)
    keys = jax.random.split(key, 9)
    scale = 1.0 / np.sqrt(H)  # PyTorch LSTM default init range

    params = {
        "w_ih_f": jax.random.uniform(keys[0], (4 * H, D), jnp.float32, -scale, scale),
        "w_hh_f": jax.random.uniform(keys[1], (4 * H, H), jnp.float32, -scale, scale),
        "b_ih_f": jax.random.uniform(keys[2], (4 * H,), jnp.float32, -scale, scale),
        "b_hh_f": jax.random.uniform(keys[3], (4 * H,), jnp.float32, -scale, scale),
        "w_ih_b": jax.random.uniform(keys[4], (4 * H, D), jnp.float32, -scale, scale),
        "w_hh_b": jax.random.uniform(keys[5], (4 * H, H), jnp.float32, -scale, scale),
        "b_ih_b": jax.random.uniform(keys[6], (4 * H,), jnp.float32, -scale, scale),
        "b_hh_b": jax.random.uniform(keys[7], (4 * H,), jnp.float32, -scale, scale),
    }

    x = jax.random.normal(keys[8], (B, T, D), jnp.float32)
    lens = jnp.array([8, 5], jnp.int32)   # sorted descending (pack_padded contract)

    # One-time weight prep, hoisted out of the per-call path.
    weights, H_, GW = prepare_lstm_params(params)

    # max_len is a static python int (== lens[0]); no device->host sync.
    out = lstm_relation_forward(x, lens, weights,
                                hidden_dim=H_, group_width=GW, max_len=T)
    out = jax.block_until_ready(out)

    ref = np_bilstm_ref(np.asarray(x), np.asarray(lens), params)
    np.testing.assert_allclose(np.asarray(out), ref, atol=1e-4, rtol=1e-4)

    print("KERNEL_OK")
</pallas_src>

<mosaic_0001>
module attributes {stable_mosaic.version = 11 : i64} {
  func.func @_bilstm_kernel(%arg0: memref<64x32xf32, #tpu.memory_space<vmem>>, %arg1: memref<8x1xf32, #tpu.memory_space<vmem>>, %arg2: memref<32x512xf32, #tpu.memory_space<vmem>>, %arg3: memref<32x512xf32, #tpu.memory_space<vmem>>, %arg4: memref<1x512xf32, #tpu.memory_space<vmem>>, %arg5: memref<128x512xf32, #tpu.memory_space<vmem>>, %arg6: memref<64x128xf32, #tpu.memory_space<vmem>>, %arg7: memref<64x512xf32, #tpu.memory_space<vmem>>, %arg8: memref<64x512xf32, #tpu.memory_space<vmem>>) attributes {dimension_semantics = [], scalar_prefetch = 0 : i64, scratch_operands = 2 : i64, tpu.core_type = #tpu.core_type<tc>} {
    %c0 = arith.constant 0 : index
    %c0_0 = arith.constant 0 : index
    %0 = vector.load %arg0[%c0, %c0_0] : memref<64x32xf32, #tpu.memory_space<vmem>>, vector<64x32xf32>
    %c0_1 = arith.constant 0 : index
    %c0_2 = arith.constant 0 : index
    %1 = vector.load %arg2[%c0_1, %c0_2] : memref<32x512xf32, #tpu.memory_space<vmem>>, vector<32x512xf32>
    %cst = arith.constant dense<0.000000e+00> : vector<64x512xf32>
    %2 = tpu.matmul %0, %1, %cst {dimension_numbers = #tpu.dot_dimension_numbers<[1], [0], [0], [1], [0, 0, 1, 1], [], []>} : vector<64x32xf32>, vector<32x512xf32>, vector<64x512xf32> -> vector<64x512xf32>
    %c0_3 = arith.constant 0 : index
    %c0_4 = arith.constant 0 : index
    %3 = vector.load %arg4[%c0_3, %c0_4] : memref<1x512xf32, #tpu.memory_space<vmem>>, vector<1x512xf32>
    %4 = vector.broadcast %3 : vector<1x512xf32> to vector<64x512xf32>
    %5 = arith.addf %2, %4 : vector<64x512xf32>
    %c0_5 = arith.constant 0 : index
    %c0_6 = arith.constant 0 : index
    %6 = vector.load %arg7[%c0_5, %c0_6] : memref<64x512xf32, #tpu.memory_space<vmem>>, vector<64x512xf32>
    tpu.vector_store %arg7[%c0_5, %c0_6], %5 {strides = array<i32>} : memref<64x512xf32, #tpu.memory_space<vmem>>, vector<64x512xf32>,
    %c0_7 = arith.constant 0 : index
    %c0_8 = arith.constant 0 : index
    %7 = vector.load %arg3[%c0_7, %c0_8] : memref<32x512xf32, #tpu.memory_space<vmem>>, vector<32x512xf32>
    %cst_9 = arith.constant dense<0.000000e+00> : vector<64x512xf32>
    %8 = tpu.matmul %0, %7, %cst_9 {dimension_numbers = #tpu.dot_dimension_numbers<[1], [0], [0], [1], [0, 0, 1, 1], [], []>} : vector<64x32xf32>, vector<32x512xf32>, vector<64x512xf32> -> vector<64x512xf32>
    %c0_10 = arith.constant 0 : index
    %c0_11 = arith.constant 0 : index
    %9 = vector.load %arg8[%c0_10, %c0_11] : memref<64x512xf32, #tpu.memory_space<vmem>>, vector<64x512xf32>
    tpu.vector_store %arg8[%c0_10, %c0_11], %8 {strides = array<i32>} : memref<64x512xf32, #tpu.memory_space<vmem>>, vector<64x512xf32>,
    %c0_12 = arith.constant 0 : index
    %c0_13 = arith.constant 0 : index
    %10 = vector.load %arg1[%c0_12, %c0_13] : memref<8x1xf32, #tpu.memory_space<vmem>>, vector<8x1xf32>
    %11 = tpu.iota {dimensions = array<i32: 1>} : vector<1x128xi32>
    %c32_i32 = arith.constant 32 : i32
    %12 = vector.broadcast %c32_i32 : i32 to vector<1x128xi32>
    %13 = arith.cmpi slt, %11, %12 : vector<1x128xi32>
    %c32_i32_14 = arith.constant 32 : i32
    %14 = vector.broadcast %c32_i32_14 : i32 to vector<1x128xi32>
    %15 = arith.cmpi sge, %11, %14 : vector<1x128xi32>
    %c64_i32 = arith.constant 64 : i32
    %16 = vector.broadcast %c64_i32 : i32 to vector<1x128xi32>
    %17 = arith.cmpi slt, %11, %16 : vector<1x128xi32>
    %18 = arith.andi %15, %17 : vector<1x128xi1>
    %cst_15 = arith.constant 0.000000e+00 : f32
    %19 = vector.broadcast %cst_15 : f32 to vector<8x128xf32>
    %cst_16 = arith.constant 0.000000e+00 : f32
    %20 = vector.broadcast %cst_16 : f32 to vector<8x128xf32>
    %c0_17 = arith.constant 0 : index
    %c0_18 = arith.constant 0 : index
    %21 = vector.load %arg7[%c0_17, %c0_18] : memref<64x512xf32, #tpu.memory_space<vmem>>, vector<8x512xf32>
    %c56 = arith.constant 56 : index
    %c0_19 = arith.constant 0 : index
    %22 = vector.load %arg8[%c56, %c0_19] : memref<64x512xf32, #tpu.memory_space<vmem>>, vector<8x512xf32>
    %23 = arith.addf %21, %22 : vector<8x512xf32>
    %c0_20 = arith.constant 0 : index
    %c0_21 = arith.constant 0 : index
    %24 = vector.load %arg5[%c0_20, %c0_21] : memref<128x512xf32, #tpu.memory_space<vmem>>, vector<128x512xf32>
    %cst_22 = arith.constant dense<0.000000e+00> : vector<8x512xf32>
    %25 = tpu.matmul %19, %24, %cst_22 {dimension_numbers = #tpu.dot_dimension_numbers<[1], [0], [0], [1], [0, 0, 1, 1], [], []>} : vector<8x128xf32>, vector<128x512xf32>, vector<8x512xf32> -> vector<8x512xf32>
    %26 = arith.addf %23, %25 : vector<8x512xf32>
    %27 = vector.extract_strided_slice %26 {offsets = [0, 0], sizes = [8, 128], strides = [1, 1]} : vector<8x512xf32> to vector<8x128xf32>
    %28 = arith.negf %27 : vector<8x128xf32>
    %29 = math.exp %28 : vector<8x128xf32>
    %cst_23 = arith.constant 1.000000e+00 : f32
    %30 = vector.broadcast %cst_23 : f32 to vector<8x128xf32>
    %31 = arith.addf %30, %29 : vector<8x128xf32>
    %32 = arith.divf %30, %31 : vector<8x128xf32>
    %33 = vector.extract_strided_slice %26 {offsets = [0, 128], sizes = [8, 128], strides = [1, 1]} : vector<8x512xf32> to vector<8x128xf32>
    %34 = arith.negf %33 : vector<8x128xf32>
    %35 = math.exp %34 : vector<8x128xf32>
    %cst_24 = arith.constant 1.000000e+00 : f32
    %36 = vector.broadcast %cst_24 : f32 to vector<8x128xf32>
    %37 = arith.addf %36, %35 : vector<8x128xf32>
    %38 = arith.divf %36, %37 : vector<8x128xf32>
    %39 = vector.extract_strided_slice %26 {offsets = [0, 256], sizes = [8, 128], strides = [1, 1]} : vector<8x512xf32> to vector<8x128xf32>
    %40 = math.tanh %39 : vector<8x128xf32>
    %41 = vector.extract_strided_slice %26 {offsets = [0, 384], sizes = [8, 128], strides = [1, 1]} : vector<8x512xf32> to vector<8x128xf32>
    %42 = arith.negf %41 : vector<8x128xf32>
    %43 = math.exp %42 : vector<8x128xf32>
    %cst_25 = arith.constant 1.000000e+00 : f32
    %44 = vector.broadcast %cst_25 : f32 to vector<8x128xf32>
    %45 = arith.addf %44, %43 : vector<8x128xf32>
    %46 = arith.divf %44, %45 : vector<8x128xf32>
    %47 = arith.mulf %38, %20 : vector<8x128xf32>
    %48 = arith.mulf %32, %40 : vector<8x128xf32>
    %49 = arith.addf %47, %48 : vector<8x128xf32>
    %50 = math.tanh %49 : vector<8x128xf32>
    %51 = arith.mulf %46, %50 : vector<8x128xf32>
    %cst_26 = arith.constant 0.000000e+00 : f32
    %52 = vector.broadcast %cst_26 : f32 to vector<8x1xf32>
    %53 = arith.cmpf ogt, %10, %52 : vector<8x1xf32>
    %cst_27 = arith.constant 7.000000e+00 : f32
    %54 = vector.broadcast %cst_27 : f32 to vector<8x1xf32>
    %55 = arith.cmpf ogt, %10, %54 : vector<8x1xf32>
    %56 = vector.broadcast %13 : vector<1x128xi1> to vector<8x128xi1>
    %57 = vector.broadcast %53 : vector<8x1xi1> to vector<8x128xi1>
    %58 = arith.andi %56, %57 : vector<8x128xi1>
    %59 = vector.broadcast %18 : vector<1x128xi1> to vector<8x128xi1>
    %60 = vector.broadcast %55 : vector<8x1xi1> to vector<8x128xi1>
    %61 = arith.andi %59, %60 : vector<8x128xi1>
    %62 = arith.ori %58, %61 : vector<8x128xi1>
    %63 = arith.select %62, %51, %19 : vector<8x128xi1>, vector<8x128xf32>
    %64 = arith.select %62, %49, %20 : vector<8x128xi1>, vector<8x128xf32>
    %cst_28 = arith.constant 0.000000e+00 : f32
    %65 = vector.broadcast %cst_28 : f32 to vector<8x128xf32>
    %66 = arith.select %62, %51, %65 : vector<8x128xi1>, vector<8x128xf32>
    %c0_29 = arith.constant 0 : index
    %c0_30 = arith.constant 0 : index
    %67 = vector.load %arg6[%c0_29, %c0_30] : memref<64x128xf32, #tpu.memory_space<vmem>>, vector<8x128xf32>
    tpu.vector_store %arg6[%c0_29, %c0_30], %66 {strides = array<i32>} : memref<64x128xf32, #tpu.memory_space<vmem>>, vector<8x128xf32>,
    %c8 = arith.constant 8 : index
    %c0_31 = arith.constant 0 : index
    %68 = vector.load %arg7[%c8, %c0_31] : memref<64x512xf32, #tpu.memory_space<vmem>>, vector<8x512xf32>
    %c48 = arith.constant 48 : index
    %c0_32 = arith.constant 0 : index
    %69 = vector.load %arg8[%c48, %c0_32] : memref<64x512xf32, #tpu.memory_space<vmem>>, vector<8x512xf32>
    %70 = arith.addf %68, %69 : vector<8x512xf32>
    %c0_33 = arith.constant 0 : index
    %c0_34 = arith.constant 0 : index
    %71 = vector.load %arg5[%c0_33, %c0_34] : memref<128x512xf32, #tpu.memory_space<vmem>>, vector<128x512xf32>
    %cst_35 = arith.constant dense<0.000000e+00> : vector<8x512xf32>
    %72 = tpu.matmul %63, %71, %cst_35 {dimension_numbers = #tpu.dot_dimension_numbers<[1], [0], [0], [1], [0, 0, 1, 1], [], []>} : vector<8x128xf32>, vector<128x512xf32>, vector<8x512xf32> -> vector<8x512xf32>
    %73 = arith.addf %70, %72 : vector<8x512xf32>
    %74 = vector.extract_strided_slice %73 {offsets = [0, 0], sizes = [8, 128], strides = [1, 1]} : vector<8x512xf32> to vector<8x128xf32>
    %75 = arith.negf %74 : vector<8x128xf32>
    %76 = math.exp %75 : vector<8x128xf32>
    %cst_36 = arith.constant 1.000000e+00 : f32
    %77 = vector.broadcast %cst_36 : f32 to vector<8x128xf32>
    %78 = arith.addf %77, %76 : vector<8x128xf32>
    %79 = arith.divf %77, %78 : vector<8x128xf32>
    %80 = vector.extract_strided_slice %73 {offsets = [0, 128], sizes = [8, 128], strides = [1, 1]} : vector<8x512xf32> to vector<8x128xf32>
    %81 = arith.negf %80 : vector<8x128xf32>
    %82 = math.exp %81 : vector<8x128xf32>
    %cst_37 = arith.constant 1.000000e+00 : f32
    %83 = vector.broadcast %cst_37 : f32 to vector<8x128xf32>
    %84 = arith.addf %83, %82 : vector<8x128xf32>
    %85 = arith.divf %83, %84 : vector<8x128xf32>
    %86 = vector.extract_strided_slice %73 {offsets = [0, 256], sizes = [8, 128], strides = [1, 1]} : vector<8x512xf32> to vector<8x128xf32>
    %87 = math.tanh %86 : vector<8x128xf32>
    %88 = vector.extract_strided_slice %73 {offsets = [0, 384], sizes = [8, 128], strides = [1, 1]} : vector<8x512xf32> to vector<8x128xf32>
    %89 = arith.negf %88 : vector<8x128xf32>
    %90 = math.exp %89 : vector<8x128xf32>
    %cst_38 = arith.constant 1.000000e+00 : f32
    %91 = vector.broadcast %cst_38 : f32 to vector<8x128xf32>
    %92 = arith.addf %91, %90 : vector<8x128xf32>
    %93 = arith.divf %91, %92 : vector<8x128xf32>
    %94 = arith.mulf %85, %64 : vector<8x128xf32>
    %95 = arith.mulf %79, %87 : vector<8x128xf32>
    %96 = arith.addf %94, %95 : vector<8x128xf32>
    %97 = math.tanh %96 : vector<8x128xf32>
    %98 = arith.mulf %93, %97 : vector<8x128xf32>
    %cst_39 = arith.constant 1.000000e+00 : f32
    %99 = vector.broadcast %cst_39 : f32 to vector<8x1xf32>
    %100 = arith.cmpf ogt, %10, %99 : vector<8x1xf32>
    %cst_40 = arith.constant 6.000000e+00 : f32
    %101 = vector.broadcast %cst_40 : f32 to vector<8x1xf32>
    %102 = arith.cmpf ogt, %10, %101 : vector<8x1xf32>
    %103 = vector.broadcast %13 : vector<1x128xi1> to vector<8x128xi1>
    %104 = vector.broadcast %100 : vector<8x1xi1> to vector<8x128xi1>
    %105 = arith.andi %103, %104 : vector<8x128xi1>
    %106 = vector.broadcast %18 : vector<1x128xi1> to vector<8x128xi1>
    %107 = vector.broadcast %102 : vector<8x1xi1> to vector<8x128xi1>
    %108 = arith.andi %106, %107 : vector<8x128xi1>
    %109 = arith.ori %105, %108 : vector<8x128xi1>
    %110 = arith.select %109, %98, %63 : vector<8x128xi1>, vector<8x128xf32>
    %111 = arith.select %109, %96, %64 : vector<8x128xi1>, vector<8x128xf32>
    %cst_41 = arith.constant 0.000000e+00 : f32
    %112 = vector.broadcast %cst_41 : f32 to vector<8x128xf32>
    %113 = arith.select %109, %98, %112 : vector<8x128xi1>, vector<8x128xf32>
    %c8_42 = arith.constant 8 : index
    %c0_43 = arith.constant 0 : index
    %114 = vector.load %arg6[%c8_42, %c0_43] : memref<64x128xf32, #tpu.memory_space<vmem>>, vector<8x128xf32>
    tpu.vector_store %arg6[%c8_42, %c0_43], %113 {strides = array<i32>} : memref<64x128xf32, #tpu.memory_space<vmem>>, vector<8x128xf32>,
    %c16 = arith.constant 16 : index
    %c0_44 = arith.constant 0 : index
    %115 = vector.load %arg7[%c16, %c0_44] : memref<64x512xf32, #tpu.memory_space<vmem>>, vector<8x512xf32>
    %c40 = arith.constant 40 : index
    %c0_45 = arith.constant 0 : index
    %116 = vector.load %arg8[%c40, %c0_45] : memref<64x512xf32, #tpu.memory_space<vmem>>, vector<8x512xf32>
    %117 = arith.addf %115, %116 : vector<8x512xf32>
    %c0_46 = arith.constant 0 : index
    %c0_47 = arith.constant 0 : index
    %118 = vector.load %arg5[%c0_46, %c0_47] : memref<128x512xf32, #tpu.memory_space<vmem>>, vector<128x512xf32>
    %cst_48 = arith.constant dense<0.000000e+00> : vector<8x512xf32>
    %119 = tpu.matmul %110, %118, %cst_48 {dimension_numbers = #tpu.dot_dimension_numbers<[1], [0], [0], [1], [0, 0, 1, 1], [], []>} : vector<8x128xf32>, vector<128x512xf32>, vector<8x512xf32> -> vector<8x512xf32>
    %120 = arith.addf %117, %119 : vector<8x512xf32>
    %121 = vector.extract_strided_slice %120 {offsets = [0, 0], sizes = [8, 128], strides = [1, 1]} : vector<8x512xf32> to vector<8x128xf32>
    %122 = arith.negf %121 : vector<8x128xf32>
    %123 = math.exp %122 : vector<8x128xf32>
    %cst_49 = arith.constant 1.000000e+00 : f32
    %124 = vector.broadcast %cst_49 : f32 to vector<8x128xf32>
    %125 = arith.addf %124, %123 : vector<8x128xf32>
    %126 = arith.divf %124, %125 : vector<8x128xf32>
    %127 = vector.extract_strided_slice %120 {offsets = [0, 128], sizes = [8, 128], strides = [1, 1]} : vector<8x512xf32> to vector<8x128xf32>
    %128 = arith.negf %127 : vector<8x128xf32>
    %129 = math.exp %128 : vector<8x128xf32>
    %cst_50 = arith.constant 1.000000e+00 : f32
    %130 = vector.broadcast %cst_50 : f32 to vector<8x128xf32>
    %131 = arith.addf %130, %129 : vector<8x128xf32>
    %132 = arith.divf %130, %131 : vector<8x128xf32>
    %133 = vector.extract_strided_slice %120 {offsets = [0, 256], sizes = [8, 128], strides = [1, 1]} : vector<8x512xf32> to vector<8x128xf32>
    %134 = math.tanh %133 : vector<8x128xf32>
    %135 = vector.extract_strided_slice %120 {offsets = [0, 384], sizes = [8, 128], strides = [1, 1]} : vector<8x512xf32> to vector<8x128xf32>
    %136 = arith.negf %135 : vector<8x128xf32>
    %137 = math.exp %136 : vector<8x128xf32>
    %cst_51 = arith.constant 1.000000e+00 : f32
    %138 = vector.broadcast %cst_51 : f32 to vector<8x128xf32>
    %139 = arith.addf %138, %137 : vector<8x128xf32>
    %140 = arith.divf %138, %139 : vector<8x128xf32>
    %141 = arith.mulf %132, %111 : vector<8x128xf32>
    %142 = arith.mulf %126, %134 : vector<8x128xf32>
    %143 = arith.addf %141, %142 : vector<8x128xf32>
    %144 = math.tanh %143 : vector<8x128xf32>
    %145 = arith.mulf %140, %144 : vector<8x128xf32>
    %cst_52 = arith.constant 2.000000e+00 : f32
    %146 = vector.broadcast %cst_52 : f32 to vector<8x1xf32>
    %147 = arith.cmpf ogt, %10, %146 : vector<8x1xf32>
    %cst_53 = arith.constant 5.000000e+00 : f32
    %148 = vector.broadcast %cst_53 : f32 to vector<8x1xf32>
    %149 = arith.cmpf ogt, %10, %148 : vector<8x1xf32>
    %150 = vector.broadcast %13 : vector<1x128xi1> to vector<8x128xi1>
    %151 = vector.broadcast %147 : vector<8x1xi1> to vector<8x128xi1>
    %152 = arith.andi %150, %151 : vector<8x128xi1>
    %153 = vector.broadcast %18 : vector<1x128xi1> to vector<8x128xi1>
    %154 = vector.broadcast %149 : vector<8x1xi1> to vector<8x128xi1>
    %155 = arith.andi %153, %154 : vector<8x128xi1>
    %156 = arith.ori %152, %155 : vector<8x128xi1>
    %157 = arith.select %156, %145, %110 : vector<8x128xi1>, vector<8x128xf32>
    %158 = arith.select %156, %143, %111 : vector<8x128xi1>, vector<8x128xf32>
    %cst_54 = arith.constant 0.000000e+00 : f32
    %159 = vector.broadcast %cst_54 : f32 to vector<8x128xf32>
    %160 = arith.select %156, %145, %159 : vector<8x128xi1>, vector<8x128xf32>
    %c16_55 = arith.constant 16 : index
    %c0_56 = arith.constant 0 : index
    %161 = vector.load %arg6[%c16_55, %c0_56] : memref<64x128xf32, #tpu.memory_space<vmem>>, vector<8x128xf32>
    tpu.vector_store %arg6[%c16_55, %c0_56], %160 {strides = array<i32>} : memref<64x128xf32, #tpu.memory_space<vmem>>, vector<8x128xf32>,
    %c24 = arith.constant 24 : index
    %c0_57 = arith.constant 0 : index
    %162 = vector.load %arg7[%c24, %c0_57] : memref<64x512xf32, #tpu.memory_space<vmem>>, vector<8x512xf32>
    %c32 = arith.constant 32 : index
    %c0_58 = arith.constant 0 : index
    %163 = vector.load %arg8[%c32, %c0_58] : memref<64x512xf32, #tpu.memory_space<vmem>>, vector<8x512xf32>
    %164 = arith.addf %162, %163 : vector<8x512xf32>
    %c0_59 = arith.constant 0 : index
    %c0_60 = arith.constant 0 : index
    %165 = vector.load %arg5[%c0_59, %c0_60] : memref<128x512xf32, #tpu.memory_space<vmem>>, vector<128x512xf32>
    %cst_61 = arith.constant dense<0.000000e+00> : vector<8x512xf32>
    %166 = tpu.matmul %157, %165, %cst_61 {dimension_numbers = #tpu.dot_dimension_numbers<[1], [0], [0], [1], [0, 0, 1, 1], [], []>} : vector<8x128xf32>, vector<128x512xf32>, vector<8x512xf32> -> vector<8x512xf32>
    %167 = arith.addf %164, %166 : vector<8x512xf32>
    %168 = vector.extract_strided_slice %167 {offsets = [0, 0], sizes = [8, 128], strides = [1, 1]} : vector<8x512xf32> to vector<8x128xf32>
    %169 = arith.negf %168 : vector<8x128xf32>
    %170 = math.exp %169 : vector<8x128xf32>
    %cst_62 = arith.constant 1.000000e+00 : f32
    %171 = vector.broadcast %cst_62 : f32 to vector<8x128xf32>
    %172 = arith.addf %171, %170 : vector<8x128xf32>
    %173 = arith.divf %171, %172 : vector<8x128xf32>
    %174 = vector.extract_strided_slice %167 {offsets = [0, 128], sizes = [8, 128], strides = [1, 1]} : vector<8x512xf32> to vector<8x128xf32>
    %175 = arith.negf %174 : vector<8x128xf32>
    %176 = math.exp %175 : vector<8x128xf32>
    %cst_63 = arith.constant 1.000000e+00 : f32
    %177 = vector.broadcast %cst_63 : f32 to vector<8x128xf32>
    %178 = arith.addf %177, %176 : vector<8x128xf32>
    %179 = arith.divf %177, %178 : vector<8x128xf32>
    %180 = vector.extract_strided_slice %167 {offsets = [0, 256], sizes = [8, 128], strides = [1, 1]} : vector<8x512xf32> to vector<8x128xf32>
    %181 = math.tanh %180 : vector<8x128xf32>
    %182 = vector.extract_strided_slice %167 {offsets = [0, 384], sizes = [8, 128], strides = [1, 1]} : vector<8x512xf32> to vector<8x128xf32>
    %183 = arith.negf %182 : vector<8x128xf32>
    %184 = math.exp %183 : vector<8x128xf32>
    %cst_64 = arith.constant 1.000000e+00 : f32
    %185 = vector.broadcast %cst_64 : f32 to vector<8x128xf32>
    %186 = arith.addf %185, %184 : vector<8x128xf32>
    %187 = arith.divf %185, %186 : vector<8x128xf32>
    %188 = arith.mulf %179, %158 : vector<8x128xf32>
    %189 = arith.mulf %173, %181 : vector<8x128xf32>
    %190 = arith.addf %188, %189 : vector<8x128xf32>
    %191 = math.tanh %190 : vector<8x128xf32>
    %192 = arith.mulf %187, %191 : vector<8x128xf32>
    %cst_65 = arith.constant 3.000000e+00 : f32
    %193 = vector.broadcast %cst_65 : f32 to vector<8x1xf32>
    %194 = arith.cmpf ogt, %10, %193 : vector<8x1xf32>
    %cst_66 = arith.constant 4.000000e+00 : f32
    %195 = vector.broadcast %cst_66 : f32 to vector<8x1xf32>
    %196 = arith.cmpf ogt, %10, %195 : vector<8x1xf32>
    %197 = vector.broadcast %13 : vector<1x128xi1> to vector<8x128xi1>
    %198 = vector.broadcast %194 : vector<8x1xi1> to vector<8x128xi1>
    %199 = arith.andi %197, %198 : vector<8x128xi1>
    %200 = vector.broadcast %18 : vector<1x128xi1> to vector<8x128xi1>
    %201 = vector.broadcast %196 : vector<8x1xi1> to vector<8x128xi1>
    %202 = arith.andi %200, %201 : vector<8x128xi1>
    %203 = arith.ori %199, %202 : vector<8x128xi1>
    %204 = arith.select %203, %192, %157 : vector<8x128xi1>, vector<8x128xf32>
    %205 = arith.select %203, %190, %158 : vector<8x128xi1>, vector<8x128xf32>
    %cst_67 = arith.constant 0.000000e+00 : f32
    %206 = vector.broadcast %cst_67 : f32 to vector<8x128xf32>
    %207 = arith.select %203, %192, %206 : vector<8x128xi1>, vector<8x128xf32>
    %c24_68 = arith.constant 24 : index
    %c0_69 = arith.constant 0 : index
    %208 = vector.load %arg6[%c24_68, %c0_69] : memref<64x128xf32, #tpu.memory_space<vmem>>, vector<8x128xf32>
    tpu.vector_store %arg6[%c24_68, %c0_69], %207 {strides = array<i32>} : memref<64x128xf32, #tpu.memory_space<vmem>>, vector<8x128xf32>,
    %c32_70 = arith.constant 32 : index
    %c0_71 = arith.constant 0 : index
    %209 = vector.load %arg7[%c32_70, %c0_71] : memref<64x512xf32, #tpu.memory_space<vmem>>, vector<8x512xf32>
    %c24_72 = arith.constant 24 : index
    %c0_73 = arith.constant 0 : index
    %210 = vector.load %arg8[%c24_72, %c0_73] : memref<64x512xf32, #tpu.memory_space<vmem>>, vector<8x512xf32>
    %211 = arith.addf %209, %210 : vector<8x512xf32>
    %c0_74 = arith.constant 0 : index
    %c0_75 = arith.constant 0 : index
    %212 = vector.load %arg5[%c0_74, %c0_75] : memref<128x512xf32, #tpu.memory_space<vmem>>, vector<128x512xf32>
    %cst_76 = arith.constant dense<0.000000e+00> : vector<8x512xf32>
    %213 = tpu.matmul %204, %212, %cst_76 {dimension_numbers = #tpu.dot_dimension_numbers<[1], [0], [0], [1], [0, 0, 1, 1], [], []>} : vector<8x128xf32>, vector<128x512xf32>, vector<8x512xf32> -> vector<8x512xf32>
    %214 = arith.addf %211, %213 : vector<8x512xf32>
    %215 = vector.extract_strided_slice %214 {offsets = [0, 0], sizes = [8, 128], strides = [1, 1]} : vector<8x512xf32> to vector<8x128xf32>
    %216 = arith.negf %215 : vector<8x128xf32>
    %217 = math.exp %216 : vector<8x128xf32>
    %cst_77 = arith.constant 1.000000e+00 : f32
    %218 = vector.broadcast %cst_77 : f32 to vector<8x128xf32>
    %219 = arith.addf %218, %217 : vector<8x128xf32>
    %220 = arith.divf %218, %219 : vector<8x128xf32>
    %221 = vector.extract_strided_slice %214 {offsets = [0, 128], sizes = [8, 128], strides = [1, 1]} : vector<8x512xf32> to vector<8x128xf32>
    %222 = arith.negf %221 : vector<8x128xf32>
    %223 = math.exp %222 : vector<8x128xf32>
    %cst_78 = arith.constant 1.000000e+00 : f32
    %224 = vector.broadcast %cst_78 : f32 to vector<8x128xf32>
    %225 = arith.addf %224, %223 : vector<8x128xf32>
    %226 = arith.divf %224, %225 : vector<8x128xf32>
    %227 = vector.extract_strided_slice %214 {offsets = [0, 256], sizes = [8, 128], strides = [1, 1]} : vector<8x512xf32> to vector<8x128xf32>
    %228 = math.tanh %227 : vector<8x128xf32>
    %229 = vector.extract_strided_slice %214 {offsets = [0, 384], sizes = [8, 128], strides = [1, 1]} : vector<8x512xf32> to vector<8x128xf32>
    %230 = arith.negf %229 : vector<8x128xf32>
    %231 = math.exp %230 : vector<8x128xf32>
    %cst_79 = arith.constant 1.000000e+00 : f32
    %232 = vector.broadcast %cst_79 : f32 to vector<8x128xf32>
    %233 = arith.addf %232, %231 : vector<8x128xf32>
    %234 = arith.divf %232, %233 : vector<8x128xf32>
    %235 = arith.mulf %226, %205 : vector<8x128xf32>
    %236 = arith.mulf %220, %228 : vector<8x128xf32>
    %237 = arith.addf %235, %236 : vector<8x128xf32>
    %238 = math.tanh %237 : vector<8x128xf32>
    %239 = arith.mulf %234, %238 : vector<8x128xf32>
    %cst_80 = arith.constant 4.000000e+00 : f32
    %240 = vector.broadcast %cst_80 : f32 to vector<8x1xf32>
    %241 = arith.cmpf ogt, %10, %240 : vector<8x1xf32>
    %cst_81 = arith.constant 3.000000e+00 : f32
    %242 = vector.broadcast %cst_81 : f32 to vector<8x1xf32>
    %243 = arith.cmpf ogt, %10, %242 : vector<8x1xf32>
    %244 = vector.broadcast %13 : vector<1x128xi1> to vector<8x128xi1>
    %245 = vector.broadcast %241 : vector<8x1xi1> to vector<8x128xi1>
    %246 = arith.andi %244, %245 : vector<8x128xi1>
    %247 = vector.broadcast %18 : vector<1x128xi1> to vector<8x128xi1>
    %248 = vector.broadcast %243 : vector<8x1xi1> to vector<8x128xi1>
    %249 = arith.andi %247, %248 : vector<8x128xi1>
    %250 = arith.ori %246, %249 : vector<8x128xi1>
    %251 = arith.select %250, %239, %204 : vector<8x128xi1>, vector<8x128xf32>
    %252 = arith.select %250, %237, %205 : vector<8x128xi1>, vector<8x128xf32>
    %cst_82 = arith.constant 0.000000e+00 : f32
    %253 = vector.broadcast %cst_82 : f32 to vector<8x128xf32>
    %254 = arith.select %250, %239, %253 : vector<8x128xi1>, vector<8x128xf32>
    %c32_83 = arith.constant 32 : index
    %c0_84 = arith.constant 0 : index
    %255 = vector.load %arg6[%c32_83, %c0_84] : memref<64x128xf32, #tpu.memory_space<vmem>>, vector<8x128xf32>
    tpu.vector_store %arg6[%c32_83, %c0_84], %254 {strides = array<i32>} : memref<64x128xf32, #tpu.memory_space<vmem>>, vector<8x128xf32>,
    %c40_85 = arith.constant 40 : index
    %c0_86 = arith.constant 0 : index
    %256 = vector.load %arg7[%c40_85, %c0_86] : memref<64x512xf32, #tpu.memory_space<vmem>>, vector<8x512xf32>
    %c16_87 = arith.constant 16 : index
    %c0_88 = arith.constant 0 : index
    %257 = vector.load %arg8[%c16_87, %c0_88] : memref<64x512xf32, #tpu.memory_space<vmem>>, vector<8x512xf32>
    %258 = arith.addf %256, %257 : vector<8x512xf32>
    %c0_89 = arith.constant 0 : index
    %c0_90 = arith.constant 0 : index
    %259 = vector.load %arg5[%c0_89, %c0_90] : memref<128x512xf32, #tpu.memory_space<vmem>>, vector<128x512xf32>
    %cst_91 = arith.constant dense<0.000000e+00> : vector<8x512xf32>
    %260 = tpu.matmul %251, %259, %cst_91 {dimension_numbers = #tpu.dot_dimension_numbers<[1], [0], [0], [1], [0, 0, 1, 1], [], []>} : vector<8x128xf32>, vector<128x512xf32>, vector<8x512xf32> -> vector<8x512xf32>
    %261 = arith.addf %258, %260 : vector<8x512xf32>
    %262 = vector.extract_strided_slice %261 {offsets = [0, 0], sizes = [8, 128], strides = [1, 1]} : vector<8x512xf32> to vector<8x128xf32>
    %263 = arith.negf %262 : vector<8x128xf32>
    %264 = math.exp %263 : vector<8x128xf32>
    %cst_92 = arith.constant 1.000000e+00 : f32
    %265 = vector.broadcast %cst_92 : f32 to vector<8x128xf32>
    %266 = arith.addf %265, %264 : vector<8x128xf32>
    %267 = arith.divf %265, %266 : vector<8x128xf32>
    %268 = vector.extract_strided_slice %261 {offsets = [0, 128], sizes = [8, 128], strides = [1, 1]} : vector<8x512xf32> to vector<8x128xf32>
    %269 = arith.negf %268 : vector<8x128xf32>
    %270 = math.exp %269 : vector<8x128xf32>
    %cst_93 = arith.constant 1.000000e+00 : f32
    %271 = vector.broadcast %cst_93 : f32 to vector<8x128xf32>
    %272 = arith.addf %271, %270 : vector<8x128xf32>
    %273 = arith.divf %271, %272 : vector<8x128xf32>
    %274 = vector.extract_strided_slice %261 {offsets = [0, 256], sizes = [8, 128], strides = [1, 1]} : vector<8x512xf32> to vector<8x128xf32>
    %275 = math.tanh %274 : vector<8x128xf32>
    %276 = vector.extract_strided_slice %261 {offsets = [0, 384], sizes = [8, 128], strides = [1, 1]} : vector<8x512xf32> to vector<8x128xf32>
    %277 = arith.negf %276 : vector<8x128xf32>
    %278 = math.exp %277 : vector<8x128xf32>
    %cst_94 = arith.constant 1.000000e+00 : f32
    %279 = vector.broadcast %cst_94 : f32 to vector<8x128xf32>
    %280 = arith.addf %279, %278 : vector<8x128xf32>
    %281 = arith.divf %279, %280 : vector<8x128xf32>
    %282 = arith.mulf %273, %252 : vector<8x128xf32>
    %283 = arith.mulf %267, %275 : vector<8x128xf32>
    %284 = arith.addf %282, %283 : vector<8x128xf32>
    %285 = math.tanh %284 : vector<8x128xf32>
    %286 = arith.mulf %281, %285 : vector<8x128xf32>
    %cst_95 = arith.constant 5.000000e+00 : f32
    %287 = vector.broadcast %cst_95 : f32 to vector<8x1xf32>
    %288 = arith.cmpf ogt, %10, %287 : vector<8x1xf32>
    %cst_96 = arith.constant 2.000000e+00 : f32
    %289 = vector.broadcast %cst_96 : f32 to vector<8x1xf32>
    %290 = arith.cmpf ogt, %10, %289 : vector<8x1xf32>
    %291 = vector.broadcast %13 : vector<1x128xi1> to vector<8x128xi1>
    %292 = vector.broadcast %288 : vector<8x1xi1> to vector<8x128xi1>
    %293 = arith.andi %291, %292 : vector<8x128xi1>
    %294 = vector.broadcast %18 : vector<1x128xi1> to vector<8x128xi1>
    %295 = vector.broadcast %290 : vector<8x1xi1> to vector<8x128xi1>
    %296 = arith.andi %294, %295 : vector<8x128xi1>
    %297 = arith.ori %293, %296 : vector<8x128xi1>
    %298 = arith.select %297, %286, %251 : vector<8x128xi1>, vector<8x128xf32>
    %299 = arith.select %297, %284, %252 : vector<8x128xi1>, vector<8x128xf32>
    %cst_97 = arith.constant 0.000000e+00 : f32
    %300 = vector.broadcast %cst_97 : f32 to vector<8x128xf32>
    %301 = arith.select %297, %286, %300 : vector<8x128xi1>, vector<8x128xf32>
    %c40_98 = arith.constant 40 : index
    %c0_99 = arith.constant 0 : index
    %302 = vector.load %arg6[%c40_98, %c0_99] : memref<64x128xf32, #tpu.memory_space<vmem>>, vector<8x128xf32>
    tpu.vector_store %arg6[%c40_98, %c0_99], %301 {strides = array<i32>} : memref<64x128xf32, #tpu.memory_space<vmem>>, vector<8x128xf32>,
    %c48_100 = arith.constant 48 : index
    %c0_101 = arith.constant 0 : index
    %303 = vector.load %arg7[%c48_100, %c0_101] : memref<64x512xf32, #tpu.memory_space<vmem>>, vector<8x512xf32>
    %c8_102 = arith.constant 8 : index
    %c0_103 = arith.constant 0 : index
    %304 = vector.load %arg8[%c8_102, %c0_103] : memref<64x512xf32, #tpu.memory_space<vmem>>, vector<8x512xf32>
    %305 = arith.addf %303, %304 : vector<8x512xf32>
    %c0_104 = arith.constant 0 : index
    %c0_105 = arith.constant 0 : index
    %306 = vector.load %arg5[%c0_104, %c0_105] : memref<128x512xf32, #tpu.memory_space<vmem>>, vector<128x512xf32>
    %cst_106 = arith.constant dense<0.000000e+00> : vector<8x512xf32>
    %307 = tpu.matmul %298, %306, %cst_106 {dimension_numbers = #tpu.dot_dimension_numbers<[1], [0], [0], [1], [0, 0, 1, 1], [], []>} : vector<8x128xf32>, vector<128x512xf32>, vector<8x512xf32> -> vector<8x512xf32>
    %308 = arith.addf %305, %307 : vector<8x512xf32>
    %309 = vector.extract_strided_slice %308 {offsets = [0, 0], sizes = [8, 128], strides = [1, 1]} : vector<8x512xf32> to vector<8x128xf32>
    %310 = arith.negf %309 : vector<8x128xf32>
    %311 = math.exp %310 : vector<8x128xf32>
    %cst_107 = arith.constant 1.000000e+00 : f32
    %312 = vector.broadcast %cst_107 : f32 to vector<8x128xf32>
    %313 = arith.addf %312, %311 : vector<8x128xf32>
    %314 = arith.divf %312, %313 : vector<8x128xf32>
    %315 = vector.extract_strided_slice %308 {offsets = [0, 128], sizes = [8, 128], strides = [1, 1]} : vector<8x512xf32> to vector<8x128xf32>
    %316 = arith.negf %315 : vector<8x128xf32>
    %317 = math.exp %316 : vector<8x128xf32>
    %cst_108 = arith.constant 1.000000e+00 : f32
    %318 = vector.broadcast %cst_108 : f32 to vector<8x128xf32>
    %319 = arith.addf %318, %317 : vector<8x128xf32>
    %320 = arith.divf %318, %319 : vector<8x128xf32>
    %321 = vector.extract_strided_slice %308 {offsets = [0, 256], sizes = [8, 128], strides = [1, 1]} : vector<8x512xf32> to vector<8x128xf32>
    %322 = math.tanh %321 : vector<8x128xf32>
    %323 = vector.extract_strided_slice %308 {offsets = [0, 384], sizes = [8, 128], strides = [1, 1]} : vector<8x512xf32> to vector<8x128xf32>
    %324 = arith.negf %323 : vector<8x128xf32>
    %325 = math.exp %324 : vector<8x128xf32>
    %cst_109 = arith.constant 1.000000e+00 : f32
    %326 = vector.broadcast %cst_109 : f32 to vector<8x128xf32>
    %327 = arith.addf %326, %325 : vector<8x128xf32>
    %328 = arith.divf %326, %327 : vector<8x128xf32>
    %329 = arith.mulf %320, %299 : vector<8x128xf32>
    %330 = arith.mulf %314, %322 : vector<8x128xf32>
    %331 = arith.addf %329, %330 : vector<8x128xf32>
    %332 = math.tanh %331 : vector<8x128xf32>
    %333 = arith.mulf %328, %332 : vector<8x128xf32>
    %cst_110 = arith.constant 6.000000e+00 : f32
    %334 = vector.broadcast %cst_110 : f32 to vector<8x1xf32>
    %335 = arith.cmpf ogt, %10, %334 : vector<8x1xf32>
    %cst_111 = arith.constant 1.000000e+00 : f32
    %336 = vector.broadcast %cst_111 : f32 to vector<8x1xf32>
    %337 = arith.cmpf ogt, %10, %336 : vector<8x1xf32>
    %338 = vector.broadcast %13 : vector<1x128xi1> to vector<8x128xi1>
    %339 = vector.broadcast %335 : vector<8x1xi1> to vector<8x128xi1>
    %340 = arith.andi %338, %339 : vector<8x128xi1>
    %341 = vector.broadcast %18 : vector<1x128xi1> to vector<8x128xi1>
    %342 = vector.broadcast %337 : vector<8x1xi1> to vector<8x128xi1>
    %343 = arith.andi %341, %342 : vector<8x128xi1>
    %344 = arith.ori %340, %343 : vector<8x128xi1>
    %345 = arith.select %344, %333, %298 : vector<8x128xi1>, vector<8x128xf32>
    %346 = arith.select %344, %331, %299 : vector<8x128xi1>, vector<8x128xf32>
    %cst_112 = arith.constant 0.000000e+00 : f32
    %347 = vector.broadcast %cst_112 : f32 to vector<8x128xf32>
    %348 = arith.select %344, %333, %347 : vector<8x128xi1>, vector<8x128xf32>
    %c48_113 = arith.constant 48 : index
    %c0_114 = arith.constant 0 : index
    %349 = vector.load %arg6[%c48_113, %c0_114] : memref<64x128xf32, #tpu.memory_space<vmem>>, vector<8x128xf32>
    tpu.vector_store %arg6[%c48_113, %c0_114], %348 {strides = array<i32>} : memref<64x128xf32, #tpu.memory_space<vmem>>, vector<8x128xf32>,
    %c56_115 = arith.constant 56 : index
    %c0_116 = arith.constant 0 : index
    %350 = vector.load %arg7[%c56_115, %c0_116] : memref<64x512xf32, #tpu.memory_space<vmem>>, vector<8x512xf32>
    %c0_117 = arith.constant 0 : index
    %c0_118 = arith.constant 0 : index
    %351 = vector.load %arg8[%c0_117, %c0_118] : memref<64x512xf32, #tpu.memory_space<vmem>>, vector<8x512xf32>
    %352 = arith.addf %350, %351 : vector<8x512xf32>
    %c0_119 = arith.constant 0 : index
    %c0_120 = arith.constant 0 : index
    %353 = vector.load %arg5[%c0_119, %c0_120] : memref<128x512xf32, #tpu.memory_space<vmem>>, vector<128x512xf32>
    %cst_121 = arith.constant dense<0.000000e+00> : vector<8x512xf32>
    %354 = tpu.matmul %345, %353, %cst_121 {dimension_numbers = #tpu.dot_dimension_numbers<[1], [0], [0], [1], [0, 0, 1, 1], [], []>} : vector<8x128xf32>, vector<128x512xf32>, vector<8x512xf32> -> vector<8x512xf32>
    %355 = arith.addf %352, %354 : vector<8x512xf32>
    %356 = vector.extract_strided_slice %355 {offsets = [0, 0], sizes = [8, 128], strides = [1, 1]} : vector<8x512xf32> to vector<8x128xf32>
    %357 = arith.negf %356 : vector<8x128xf32>
    %358 = math.exp %357 : vector<8x128xf32>
    %cst_122 = arith.constant 1.000000e+00 : f32
    %359 = vector.broadcast %cst_122 : f32 to vector<8x128xf32>
    %360 = arith.addf %359, %358 : vector<8x128xf32>
    %361 = arith.divf %359, %360 : vector<8x128xf32>
    %362 = vector.extract_strided_slice %355 {offsets = [0, 128], sizes = [8, 128], strides = [1, 1]} : vector<8x512xf32> to vector<8x128xf32>
    %363 = arith.negf %362 : vector<8x128xf32>
    %364 = math.exp %363 : vector<8x128xf32>
    %cst_123 = arith.constant 1.000000e+00 : f32
    %365 = vector.broadcast %cst_123 : f32 to vector<8x128xf32>
    %366 = arith.addf %365, %364 : vector<8x128xf32>
    %367 = arith.divf %365, %366 : vector<8x128xf32>
    %368 = vector.extract_strided_slice %355 {offsets = [0, 256], sizes = [8, 128], strides = [1, 1]} : vector<8x512xf32> to vector<8x128xf32>
    %369 = math.tanh %368 : vector<8x128xf32>
    %370 = vector.extract_strided_slice %355 {offsets = [0, 384], sizes = [8, 128], strides = [1, 1]} : vector<8x512xf32> to vector<8x128xf32>
    %371 = arith.negf %370 : vector<8x128xf32>
    %372 = math.exp %371 : vector<8x128xf32>
    %cst_124 = arith.constant 1.000000e+00 : f32
    %373 = vector.broadcast %cst_124 : f32 to vector<8x128xf32>
    %374 = arith.addf %373, %372 : vector<8x128xf32>
    %375 = arith.divf %373, %374 : vector<8x128xf32>
    %376 = arith.mulf %367, %346 : vector<8x128xf32>
    %377 = arith.mulf %361, %369 : vector<8x128xf32>
    %378 = arith.addf %376, %377 : vector<8x128xf32>
    %379 = math.tanh %378 : vector<8x128xf32>
    %380 = arith.mulf %375, %379 : vector<8x128xf32>
    %cst_125 = arith.constant 7.000000e+00 : f32
    %381 = vector.broadcast %cst_125 : f32 to vector<8x1xf32>
    %382 = arith.cmpf ogt, %10, %381 : vector<8x1xf32>
    %cst_126 = arith.constant 0.000000e+00 : f32
    %383 = vector.broadcast %cst_126 : f32 to vector<8x1xf32>
    %384 = arith.cmpf ogt, %10, %383 : vector<8x1xf32>
    %385 = vector.broadcast %13 : vector<1x128xi1> to vector<8x128xi1>
    %386 = vector.broadcast %382 : vector<8x1xi1> to vector<8x128xi1>
    %387 = arith.andi %385, %386 : vector<8x128xi1>
    %388 = vector.broadcast %18 : vector<1x128xi1> to vector<8x128xi1>
    %389 = vector.broadcast %384 : vector<8x1xi1> to vector<8x128xi1>
    %390 = arith.andi %388, %389 : vector<8x128xi1>
    %391 = arith.ori %387, %390 : vector<8x128xi1>
    %cst_127 = arith.constant 0.000000e+00 : f32
    %392 = vector.broadcast %cst_127 : f32 to vector<8x128xf32>
    %393 = arith.select %391, %380, %392 : vector<8x128xi1>, vector<8x128xf32>
    %c56_128 = arith.constant 56 : index
    %c0_129 = arith.constant 0 : index
    %394 = vector.load %arg6[%c56_128, %c0_129] : memref<64x128xf32, #tpu.memory_space<vmem>>, vector<8x128xf32>
    tpu.vector_store %arg6[%c56_128, %c0_129], %393 {strides = array<i32>} : memref<64x128xf32, #tpu.memory_space<vmem>>, vector<8x128xf32>,
    return
  }
}

</mosaic_0001>

<bundles_post_ra>
// kernel: lstm_relation_forward.1
= control target key start
LH: loop header
LB: loop body
LE: loop exit
PB: predicated region body
PF: predicated region fallthrough
CT: control target
= control target key end

     0   :  { %11 = vsyncpa [#allocation5], 0  ;;  %s4516_s0 = inlined_call_operand.vmem [shape: f32[64,32], index: 0, kind: input, shape index: {}]   ;;  %s4517_s1 = inlined_call_operand.vmem [shape: f32[8,1], index: 1, kind: input, shape index: {}]   ;;  %s4518_s2 = inlined_call_operand.vmem [shape: f32[32,512], index: 2, kind: input, shape index: {}]   ;;  %s4519_s3 = inlined_call_operand.hbm [shape: f32[32,512], index: 3, kind: input, shape index: {}]   ;;  %s4520_s4 = inlined_call_operand.vmem [shape: f32[1,512], index: 4, kind: input, shape index: {}]   ;;  %s4521_s5 = inlined_call_operand.hbm [shape: f32[128,512], index: 5, kind: input, shape index: {}]   ;;  %s4522_s6 = inlined_call_operand.vmem [shape: f32[64,128], index: 6, kind: output, shape index: {}]  }
   0x1   :  { %12 = vsyncpa [#allocation7], 0  ;;  %s3622_s21 = smov [#allocation4]   ;;  %s3574_s25 = scalar_lea.hbm %s4519_s3, 2048 }
   0x2   :  { %s24_s22 = sshll.u32 %s3622_s21, 4  ;;  %p3575_p0 = scmp.ne.s32.totalorder %s4519_s3, %s3574_s25  ;;  %s25_s22 = int_to_ptr.vmem [resolvable:$true] %s24_s22 }
   0x3   :  { %p3578_p1 = scmp.lt.u32.totalorder %s3574_s25, %s4519_s3 }
   0x5   :  { %p3580_p2 = pnand %p3578_p1, %p3575_p0 }
   0x7   :  { %3583 = shalt.err (!%p3580_p2)
}
   0x8   :  { %s3584_s30 = scalar_lea.vmem %s25_s22, 2048  ;;  %p3589_p4 = scmp.lt.s32.totalorder %s25_s22, %s25_s22 }
   0x9   :  { %p3585_p3 = scmp.ne.s32.totalorder %s25_s22, %s3584_s30  ;;  %p3590_p5 = scmp.lt.s32.totalorder %s3584_s30, %s3584_s30 }
   0xb   :  { %p3591_p6 = por %p3590_p5, %p3589_p4 }
   0xd   :  { %p3592_p7 = pnand %p3591_p6, %p3585_p3 }
   0xf   :  { %3595 = shalt.err (!%p3592_p7)
}
  0x10   :  { %s3623_s7 = smov 512   ;;  %s3624_s8 = smov 32  }
  0x11   :  { %30 = dma.hbm_to_vmem [thread:$0]  %s4519_s3, 2048, %s25_s22, [#allocation5], %s3623_s7, %s3623_s7, %s3624_s8  }
  0x12   :  { %s3625_s11 = smov [#allocation6]   ;;  %s3596_s15 = scalar_lea.hbm %s4521_s5, 8192 }
  0x13   :  { %s38_s12 = sshll.u32 %s3625_s11, 4  ;;  %p3597_p8 = scmp.ne.s32.totalorder %s4521_s5, %s3596_s15  ;;  %s39_s12 = int_to_ptr.vmem [resolvable:$true] %s38_s12 }
  0x14   :  { %p3600_p9 = scmp.lt.u32.totalorder %s3596_s15, %s4521_s5 }
  0x16   :  { %p3602_p10 = pnand %p3600_p9, %p3597_p8 }
  0x18   :  { %3605 = shalt.err (!%p3602_p10)
}
  0x19   :  { %s3606_s20 = scalar_lea.vmem %s39_s12, 8192  ;;  %p3611_p12 = scmp.lt.s32.totalorder %s39_s12, %s39_s12 }
  0x1a   :  { %p3607_p11 = scmp.ne.s32.totalorder %s39_s12, %s3606_s20  ;;  %p3612_p13 = scmp.lt.s32.totalorder %s3606_s20, %s3606_s20 }
  0x1c   :  { %p3613_p0 = por %p3612_p13, %p3611_p12 }
  0x1e   :  { %p3614_p1 = pnand %p3613_p0, %p3607_p11 }
  0x20   :  { %3617 = shalt.err (!%p3614_p1)
}
  0x21   :  { %44 = dma.hbm_to_vmem [thread:$0]  %s4521_s5, 8192, %s39_s12, [#allocation7], %s3623_s7, %s3623_s7, %s3624_s8  }
  0x22   :  { %3618 = dma.done.wait [#allocation5], 2048  }
  0x23   :  { %3619 = vsyncadd [#allocation5], 4294965248 }
  0x24   :  { %3620 = dma.done.wait [#allocation7], 8192  }
  0x25   :  { %3621 = vsyncadd [#allocation7], 4294959104  ;;  %v3626_v0 = vmov 0.0   ;;  %v3627_v1 = vmov 0   ;;  %v60_v2 = vld [vmem:[%s4518_s2 + $0x8] sm:$0xff]  ;;  %v62_v4 = vld [vmem:[%s4518_s2 + $0x18] sm:$0xff] }
  0x26   :  { %186 = vmatprep.mubr.f32.mxu0 %v3626_v0  ;;  %299 = vmatprep.mubr.f32.mxu1 %v3626_v0  ;;  %v64_v3 = vld [vmem:[%s4518_s2 + $0x28] sm:$0xff]  ;;  %v66_v6 = vld [vmem:[%s4518_s2 + $0x38] sm:$0xff]  ;;  %v59_v7 = vld [vmem:[%s4518_s2] sm:$0xff]  ;;  %vm97_vm0 = vcmask 261120  }
  0x27   :  { %3444 = vset.pattern.permute.xlu0 %v3627_v1  ;;  %3445 = vset.pattern.permute.xlu1 %v3627_v1  ;;  %v2798_v5 = vpack.c.bf16 %v64_v3, %v60_v2  ;;  %v63_v8 = vld [vmem:[%s4518_s2 + $0x20] sm:$0xff]  ;;  %v2806_v9 = vpack.c.bf16 %v66_v6, %v62_v4  ;;  %v61_v11 = vld [vmem:[%s4518_s2 + $0x10] sm:$0xff]  ;;  %v68_v13 = vld [vmem:[%s4518_s2 + $0x48] sm:$0xff] }
  0x28   :  { %v2800_v10 = vpack.c.bf16 %v63_v8, %v59_v7  ;;  %v65_v12 = vld [vmem:[%s4518_s2 + $0x30] sm:$0xff]  ;;  %v72_v15 = vld [vmem:[%s4518_s2 + $0x68] sm:$0xff]  ;;  %v70_v16 = vld [vmem:[%s4518_s2 + $0x58] sm:$0xff] }
  0x29   :  { %2799 = vmatprep.subr.bf16.mxu0 %v2798_v5  ;;  %v2808_v14 = vpack.c.bf16 %v65_v12, %v61_v11  ;;  %v74_v17 = vld [vmem:[%s4518_s2 + $0x78] sm:$0xff]  ;;  %2807 = vmatprep.subr.bf16.mxu1 %v2806_v9  ;;  %v2802_v18 = vpack.c.bf16 %v72_v15, %v68_v13  ;;  %v67_v20 = vld [vmem:[%s4518_s2 + $0x40] sm:$0xff]  ;;  %v69_v22 = vld [vmem:[%s4518_s2 + $0x50] sm:$0xff] }
  0x2a   :  { %2801 = vmatpush1.bf16.msra.mxu0 %v2800_v10  ;;  %v2810_v19 = vpack.c.bf16 %v74_v17, %v70_v16  ;;  %v71_v21 = vld [vmem:[%s4518_s2 + $0x60] sm:$0xff]  ;;  %v73_v24 = vld [vmem:[%s4518_s2 + $0x70] sm:$0xff]  ;;  %v381_v25 = vld [vmem:[#allocation4 + $0x8] sm:$0xff] }
  0x2b   :  { %2809 = vmatpush1.bf16.msra.mxu1 %v2808_v14  ;;  %v2804_v23 = vpack.c.bf16 %v71_v21, %v67_v20  ;;  %2803 = vmatprep.subr.bf16.mxu0 %v2802_v18  ;;  %v2812_v26 = vpack.c.bf16 %v73_v24, %v69_v22  ;;  %v385_v27 = vld [vmem:[#allocation4 + $0x28] sm:$0xff]  ;;  %v380_v28 = vld [vmem:[#allocation4] sm:$0xff]  ;;  %v383_v33 = vld [vmem:[#allocation4 + $0x18] sm:$0xff] }
  0x2c   :  { %2811 = vmatprep.subr.bf16.mxu1 %v2810_v19  ;;  %v384_v29 = vld [vmem:[#allocation4 + $0x20] sm:$0xff]  ;;  %v2814_v30 = vpack.c.bf16 %v385_v27, %v381_v25  ;;  %v387_v34 = vld [vmem:[#allocation4 + $0x38] sm:$0xff]  ;;  %v382_v36 = vld [vmem:[#allocation4 + $0x10] sm:$0xff] }
  0x2d   :  { %v3742_v31 = vld [vmem:[%s4516_s0] sm:$0xff]  ;;  %v2816_v32 = vpack.c.bf16 %v384_v29, %v380_v28  ;;  %v2822_v35 = vpack.c.bf16 %v387_v34, %v383_v33  ;;  %v386_v37 = vld [vmem:[#allocation4 + $0x30] sm:$0xff]  ;;  %v389_v38 = vld [vmem:[#allocation4 + $0x48] sm:$0xff] }
  0x2e   :  { %2805 = vmatpush1.bf16.msra.mxu0 %v2804_v23  ;;  %v2824_v39 = vpack.c.bf16 %v386_v37, %v382_v36  ;;  %v393_v40 = vld [vmem:[#allocation4 + $0x68] sm:$0xff]  ;;  %v388_v41 = vld [vmem:[#allocation4 + $0x40] sm:$0xff]  ;;  %v391_v45 = vld [vmem:[#allocation4 + $0x58] sm:$0xff] }
  0x2f   :  { %2813 = vmatpush1.bf16.msra.mxu1 %v2812_v26  ;;  %2815 = vmatprep.subr.bf16.mxu0 %v2814_v30  ;;  %v392_v42 = vld [vmem:[#allocation4 + $0x60] sm:$0xff]  ;;  %v3749_v43 = vld [vmem:[%s4516_s0 + $0x8] sm:$0xff]  ;;  %v2818_v44 = vpack.c.bf16 %v393_v40, %v389_v38  ;;  %v395_v46 = vld [vmem:[#allocation4 + $0x78] sm:$0xff] }
  0x30   :  { %2823 = vmatprep.subr.bf16.mxu1 %v2822_v35  ;;  %v390_v47 = vld [vmem:[#allocation4 + $0x50] sm:$0xff]  ;;  %v2820_v48 = vpack.c.bf16 %v392_v42, %v388_v41  ;;  %v2826_v49 = vpack.c.bf16 %v395_v46, %v391_v45  ;;  %v674_v51 = vld [vmem:[#allocation6 + $0x8] sm:$0xff]  ;;  %v676_v55 = vld [vmem:[#allocation6 + $0x18] sm:$0xff] }
  0x31   :  { %2740 = vmatmul.mubr.msk.f32.vlgmr.msra.gmra.mrb[0].mxu0 %vm97_vm0, %v3742_v31  ;;  %v394_v50 = vld [vmem:[#allocation4 + $0x70] sm:$0xff]  ;;  %v678_v52 = vld [vmem:[#allocation6 + $0x28] sm:$0xff]  ;;  %v680_v56 = vld [vmem:[#allocation6 + $0x38] sm:$0xff] }
  0x32   :  { %2748 = vmatmul.mubr.msk.f32.vlgmr.msra.gmra.mrb[0].mxu1 %vm97_vm0, %v3742_v31  ;;  %2817 = vmatpush1.bf16.msra.mxu0 %v2816_v32  ;;  %v2828_v53 = vpack.c.bf16 %v394_v50, %v390_v47  ;;  %v3755_v54 = vpack.c.bf16 %v678_v52, %v674_v51  ;;  %v3765_v57 = vld [vmem:[%s4516_s0 + $0x10] sm:$0xff]  ;;  %v3767_v58 = vpack.c.bf16 %v680_v56, %v676_v55  ;;  %v3780_v59 = vld [vmem:[%s4516_s0 + $0x18] sm:$0xff]  ;;  %v3791_v60 = vld [vmem:[%s4516_s0 + $0x20] sm:$0xff] }
  0x33   :  { %192 = vmatprep.mubr.f32.mxu0 %v3626_v0  ;;  %305 = vmatprep.mubr.f32.mxu1 %v3626_v0  ;;  %v3802_v61 = vld [vmem:[%s4516_s0 + $0x28] sm:$0xff]  ;;  %v3813_v62 = vld [vmem:[%s4516_s0 + $0x30] sm:$0xff]  ;;  %v3819_v63 = vld [vmem:[%s4517_s1] sm:$0xff] }
  0x34   :  { %2825 = vmatpush1.bf16.msra.mxu1 %v2824_v39  ;;  %2819 = vmatprep.subr.bf16.mxu0 %v2818_v44  ;;  %vm907_vm1 = vcmp.gt.f32.partialorder %v3819_v63, 0.0  ;;  %vm1175_vm2 = vcmp.gt.f32.partialorder %v3819_v63, 1.0  ;;  %vm908_vm3 = vcmp.gt.f32.partialorder %v3819_v63, 7.0  ;;  %v3832_v2 = vld [vmem:[%s4516_s0 + $0x38] sm:$0xff]  ;;  %vm1176_vm4 = vcmp.gt.f32.partialorder %v3819_v63, 6.0  ;;  %v673_v7 = vld [vmem:[#allocation6] sm:$0xff] }
  0x35   :  { %2741 = vmatmul.mubr.msk.f32.gmra.mrb[2].mxu0 %vm97_vm0, %v3749_v43  ;;  %2827 = vmatprep.subr.bf16.mxu1 %v2826_v49  ;;  %v911_v3 = vsel %vm907_vm1, 1, %v3627_v1  ;;  %v1177_v4 = vsel %vm1175_vm2, 1, %v3627_v1  ;;  %v919_v5 = vsel %vm908_vm3, 1, %v3627_v1  ;;  %v1183_v6 = vsel %vm1176_vm4, 1, %v3627_v1  ;;  %v677_v8 = vld [vmem:[#allocation6 + $0x20] sm:$0xff]  ;;  %v682_v9 = vld [vmem:[#allocation6 + $0x48] sm:$0xff] }
  0x36   :  { %2749 = vmatmul.mubr.msk.f32.gmra.mrb[2].mxu1 %vm97_vm0, %v3749_v43  ;;  %198 = vmatprep.mubr.f32.mxu0 %v3626_v0  ;;  %vm1440_vm5 = vcmp.gt.f32.partialorder %v3819_v63, 2.0  ;;  %vm1441_vm6 = vcmp.gt.f32.partialorder %v3819_v63, 5.0  ;;  %v686_v11 = vld [vmem:[#allocation6 + $0x68] sm:$0xff]  ;;  %v675_v12 = vld [vmem:[#allocation6 + $0x10] sm:$0xff]  ;;  %v3850_v15 = vpack.c.bf16 %v677_v8, %v673_v7  ;;  %v684_v16 = vld [vmem:[#allocation6 + $0x58] sm:$0xff]  ;;  %vm1706_vm7 = vcmp.gt.f32.partialorder %v3819_v63, 4.0 }
  0x37   :  { %311 = vmatprep.mubr.f32.mxu1 %v3626_v0  ;;  %2821 = vmatpush1.bf16.msra.mxu0 %v2820_v48  ;;  %v1442_v10 = vsel %vm1440_vm5, 1, %v3627_v1  ;;  %v679_v13 = vld [vmem:[#allocation6 + $0x30] sm:$0xff]  ;;  %v1448_v14 = vsel %vm1441_vm6, 1, %v3627_v1  ;;  %v688_v17 = vld [vmem:[#allocation6 + $0x78] sm:$0xff]  ;;  %v681_v18 = vld [vmem:[#allocation6 + $0x40] sm:$0xff]  ;;  %v3852_v20 = vpack.c.bf16 %v686_v11, %v682_v9  ;;  %vm1705_vm8 = vcmp.gt.f32.partialorder %v3819_v63, 3.0 }
  0x38   :  { %2829 = vmatpush1.bf16.msra.mxu1 %v2828_v53  ;;  %2831 = vmatprep.subr.bf16.mxu0 %v3755_v54  ;;  %v685_v19 = vld [vmem:[#allocation6 + $0x60] sm:$0xff]  ;;  %v3854_v21 = vpack.c.bf16 %v679_v13, %v675_v12  ;;  %v690_v22 = vld [vmem:[#allocation6 + $0x88] sm:$0xff]  ;;  %v3858_v23 = vpack.c.bf16 %v688_v17, %v684_v16  ;;  %v683_v25 = vld [vmem:[#allocation6 + $0x50] sm:$0xff]  ;;  %v1707_v63 = vsel %vm1705_vm8, 1, %v3627_v1 }
  0x39   :  { %2742 = vmatmul.mubr.msk.f32.gmra.mrb[4].mxu0 %vm97_vm0, %v3765_v57  ;;  %2863 = vmatprep.subr.bf16.mxu1 %v3767_v58  ;;  %v694_v24 = vld [vmem:[#allocation6 + $0xa8] sm:$0xff]  ;;  %v687_v26 = vld [vmem:[#allocation6 + $0x70] sm:$0xff]  ;;  %v3863_v27 = vpack.c.bf16 %v685_v19, %v681_v18  ;;  %v692_v28 = vld [vmem:[#allocation6 + $0x98] sm:$0xff] }
  0x3a   :  { %2750 = vmatmul.mubr.msk.f32.gmra.mrb[4].mxu1 %vm97_vm0, %v3765_v57  ;;  %204 = vmatprep.mubr.f32.mxu0 %v3626_v0  ;;  %v696_v29 = vld [vmem:[#allocation6 + $0xb8] sm:$0xff]  ;;  %v689_v30 = vld [vmem:[#allocation6 + $0x80] sm:$0xff]  ;;  %v3869_v33 = vpack.c.bf16 %v694_v24, %v690_v22  ;;  %v3871_v34 = vpack.c.bf16 %v687_v26, %v683_v25  ;;  %v695_v36 = vld [vmem:[#allocation6 + $0xb0] sm:$0xff] }
  0x3b   :  { %317 = vmatprep.mubr.f32.mxu1 %v3626_v0  ;;  %913 = vperm.xlu0 %3444, %v911_v3   ;;  %v693_v32 = vld [vmem:[#allocation6 + $0xa0] sm:$0xff]  ;;  %v3876_v35 = vpack.c.bf16 %v696_v29, %v692_v28  ;;  %v698_v37 = vld [vmem:[#allocation6 + $0xc8] sm:$0xff]  ;;  %v700_v40 = vld [vmem:[#allocation6 + $0xd8] sm:$0xff] }
  0x3c   :  { %1179 = vperm.xlu1 %3445, %v1177_v4   ;;  %v702_v38 = vld [vmem:[#allocation6 + $0xe8] sm:$0xff]  ;;  %v3881_v39 = vpack.c.bf16 %v693_v32, %v689_v30  ;;  %v704_v41 = vld [vmem:[#allocation6 + $0xf8] sm:$0xff]  ;;  %v697_v45 = vld [vmem:[#allocation6 + $0xc0] sm:$0xff] }
  0x3d   :  { %2743 = vmatmul.mubr.msk.f32.gmra.mrb[6].mxu0 %vm97_vm0, %v3780_v59  ;;  %v3889_v44 = vpack.c.bf16 %v702_v38, %v698_v37  ;;  %v699_v46 = vld [vmem:[#allocation6 + $0xd0] sm:$0xff]  ;;  %v3894_v47 = vpack.c.bf16 %v704_v41, %v700_v40  ;;  %v706_v49 = vld [vmem:[#allocation6 + $0x108] sm:$0xff]  ;;  %v708_v51 = vld [vmem:[#allocation6 + $0x118] sm:$0xff] }
  0x3e   :  { %2751 = vmatmul.mubr.msk.f32.gmra.mrb[6].mxu1 %vm97_vm0, %v3780_v59  ;;  %210 = vmatprep.mubr.f32.mxu0 %v3626_v0  ;;  %v703_v48 = vld [vmem:[#allocation6 + $0xf0] sm:$0xff]  ;;  %v710_v50 = vld [vmem:[#allocation6 + $0x128] sm:$0xff]  ;;  %v712_v52 = vld [vmem:[#allocation6 + $0x138] sm:$0xff] }
  0x3f   :  { %323 = vmatprep.mubr.f32.mxu1 %v3626_v0  ;;  %921 = vperm.xlu0 %3444, %v919_v5   ;;  %v3905_v55 = vpack.c.bf16 %v703_v48, %v699_v46  ;;  %v3907_v56 = vpack.c.bf16 %v710_v50, %v706_v49  ;;  %v705_v3 = vld [vmem:[#allocation6 + $0x100] sm:$0xff]  ;;  %v707_v4 = vld [vmem:[#allocation6 + $0x110] sm:$0xff]  ;;  %v3912_v5 = vpack.c.bf16 %v712_v52, %v708_v51  ;;  %v714_v7 = vld [vmem:[#allocation6 + $0x148] sm:$0xff] }
  0x40   :  { %1185 = vperm.xlu1 %3445, %v1183_v6   ;;  %v711_v6 = vld [vmem:[#allocation6 + $0x130] sm:$0xff]  ;;  %v718_v8 = vld [vmem:[#allocation6 + $0x168] sm:$0xff]  ;;  %v716_v9 = vld [vmem:[#allocation6 + $0x158] sm:$0xff] }
  0x41   :  { %2744 = vmatmul.mubr.msk.f32.gmra.mrb[8].mxu0 %vm97_vm0, %v3791_v60  ;;  %v3923_v12 = vpack.c.bf16 %v711_v6, %v707_v4  ;;  %v3925_v13 = vpack.c.bf16 %v718_v8, %v714_v7  ;;  %v715_v16 = vld [vmem:[#allocation6 + $0x150] sm:$0xff]  ;;  %v722_v19 = vld [vmem:[#allocation6 + $0x188] sm:$0xff]  ;;  %v724_v24 = vld [vmem:[#allocation6 + $0x198] sm:$0xff] }
  0x42   :  { %2752 = vmatmul.mubr.msk.f32.gmra.mrb[8].mxu1 %vm97_vm0, %v3791_v60  ;;  %216 = vmatprep.mubr.f32.mxu0 %v3626_v0  ;;  %v719_v18 = vld [vmem:[#allocation6 + $0x170] sm:$0xff]  ;;  %v726_v22 = vld [vmem:[#allocation6 + $0x1a8] sm:$0xff]  ;;  %v728_v25 = vld [vmem:[#allocation6 + $0x1b8] sm:$0xff] }
  0x43   :  { %329 = vmatprep.mubr.f32.mxu1 %v3626_v0  ;;  %1444 = vperm.xlu0 %3444, %v1442_v10   ;;  %v720_v10 = vld [vmem:[#allocation6 + $0x178] sm:$0xff]  ;;  %v3941_v28 = vpack.c.bf16 %v719_v18, %v715_v16  ;;  %v3943_v29 = vpack.c.bf16 %v726_v22, %v722_v19  ;;  %v721_v30 = vld [vmem:[#allocation6 + $0x180] sm:$0xff]  ;;  %v723_v32 = vld [vmem:[#allocation6 + $0x190] sm:$0xff] }
  0x44   :  { %1450 = vperm.xlu1 %3445, %v1448_v14   ;;  %v713_v14 = vld [vmem:[#allocation6 + $0x140] sm:$0xff]  ;;  %v3930_v17 = vpack.c.bf16 %v720_v10, %v716_v9  ;;  %v730_v37 = vld [vmem:[#allocation6 + $0x1c8] sm:$0xff]  ;;  %v732_v40 = vld [vmem:[#allocation6 + $0x1d8] sm:$0xff] }
  0x45   :  { %2745 = vmatmul.mubr.msk.f32.gmra.mrb[10].mxu0 %vm97_vm0, %v3802_v61  ;;  %v734_v38 = vld [vmem:[#allocation6 + $0x1e8] sm:$0xff]  ;;  %v736_v41 = vld [vmem:[#allocation6 + $0x1f8] sm:$0xff]  ;;  %v729_v48 = vld [vmem:[#allocation6 + $0x1c0] sm:$0xff] }
  0x46   :  { %2753 = vmatmul.mubr.msk.f32.gmra.mrb[10].mxu1 %vm97_vm0, %v3802_v61  ;;  %222 = vmatprep.mubr.f32.mxu0 %v3626_v0  ;;  %v3961_v46 = vpack.c.bf16 %v734_v38, %v730_v37  ;;  %v3966_v49 = vpack.c.bf16 %v736_v41, %v732_v40  ;;  %v731_v50 = vld [vmem:[#allocation6 + $0x1d0] sm:$0xff]  ;;  %v1476_v6 = vld [vmem:[#allocation6 + $0x28] sm:$0xff]  ;;  %v2499_v22 = vld [vmem:[#allocation6 + $0x20] sm:$0xff] }
  0x47   :  { %335 = vmatprep.mubr.f32.mxu1 %v3626_v0  ;;  %v735_v51 = vld [vmem:[#allocation6 + $0x1f0] sm:$0xff]  ;;  %1709 = vperm.xlu0 %3444, %v1707_v63  }
  0x49   :  { %2746 = vmatmul.mubr.msk.f32.gmra.mrb[12].mxu0 %vm97_vm0, %v3813_v62 }
  0x4a   :  { %2754 = vmatmul.mubr.msk.f32.gmra.mrb[12].mxu1 %vm97_vm0, %v3813_v62  ;;  %228 = vmatprep.mubr.f32.mxu0 %v3626_v0 }
  0x4b   :  { %341 = vmatprep.mubr.f32.mxu1 %v3626_v0 }
  0x4d   :  { %2747 = vmatmul.mubr.msk.f32.gmra.mrb[14].mxu0 %vm97_vm0, %v3832_v2 }
  0x4e   :  { %2755 = vmatmul.mubr.msk.f32.gmra.mrb[14].mxu1 %vm97_vm0, %v3832_v2  ;;  %460 = vmatprep.mubr.f32.mxu0 %v3626_v0 }
  0x4f   :  { %573 = vmatprep.mubr.f32.mxu1 %v3626_v0 }
  0x55   :  { %2756 = vmatmul.mubr.msk.f32.vlgmr.msra.gmra.mrb[14].mxu0 %vm97_vm0, %v3742_v31 }
  0x56   :  { %2764 = vmatmul.mubr.msk.f32.vlgmr.msra.gmra.mrb[14].mxu1 %vm97_vm0, %v3742_v31  ;;  %2833 = vmatpush1.bf16.msra.mxu0 %v3850_v15  ;;  %v691_v31 = vld [vmem:[#allocation6 + $0x90] sm:$0xff] }
  0x57   :  { %466 = vmatprep.mubr.f32.mxu0 %v3626_v0  ;;  %579 = vmatprep.mubr.f32.mxu1 %v3626_v0  ;;  %v3887_v42 = vpack.c.bf16 %v695_v36, %v691_v31  ;;  %v3948_v31 = vpack.c.bf16 %v728_v25, %v724_v24  ;;  %v727_v36 = vld [vmem:[#allocation6 + $0x1b0] sm:$0xff] }
  0x58   :  { %2835 = vmatprep.subr.bf16.mxu0 %v3852_v20  ;;  %2865 = vmatpush1.bf16.msra.mxu1 %v3854_v21 }
  0x59   :  { %2757 = vmatmul.mubr.msk.f32.gmra.mrb[12].mxu0 %vm97_vm0, %v3749_v43  ;;  %2867 = vmatprep.subr.bf16.mxu1 %v3858_v23 }
  0x5a   :  { %2765 = vmatmul.mubr.msk.f32.gmra.mrb[12].mxu1 %vm97_vm0, %v3749_v43  ;;  %2837 = vmatpush1.bf16.msra.mxu0 %v3863_v27  ;;  %v701_v43 = vld [vmem:[#allocation6 + $0xe0] sm:$0xff] }
  0x5b   :  { %472 = vmatprep.mubr.f32.mxu0 %v3626_v0  ;;  %585 = vmatprep.mubr.f32.mxu1 %v3626_v0  ;;  %v3901_v53 = vpack.c.bf16 %v701_v43, %v697_v45  ;;  %v3959_v43 = vpack.c.bf16 %v727_v36, %v723_v32  ;;  %v75_v32 = vld [vmem:[%s4520_s4] sm:$0xf] }
  0x5c   :  { %2839 = vmatprep.subr.bf16.mxu0 %v3869_v33  ;;  %2869 = vmatpush1.bf16.msra.mxu1 %v3871_v34 }
  0x5d   :  { %2758 = vmatmul.mubr.msk.f32.gmra.mrb[10].mxu0 %vm97_vm0, %v3765_v57  ;;  %2871 = vmatprep.subr.bf16.mxu1 %v3876_v35 }
  0x5e   :  { %2766 = vmatmul.mubr.msk.f32.gmra.mrb[10].mxu1 %vm97_vm0, %v3765_v57  ;;  %2841 = vmatpush1.bf16.msra.mxu0 %v3881_v39  ;;  %v709_v57 = vld [vmem:[#allocation6 + $0x120] sm:$0xff] }
  0x5f   :  { %478 = vmatprep.mubr.f32.mxu0 %v3626_v0  ;;  %591 = vmatprep.mubr.f32.mxu1 %v3626_v0  ;;  %v3919_v11 = vpack.c.bf16 %v709_v57, %v705_v3  ;;  %v3979_v3 = vpack.c.bf16 %v735_v51, %v731_v50 }
  0x60   :  { %2873 = vmatpush1.bf16.msra.mxu1 %v3887_v42  ;;  %2843 = vmatprep.subr.bf16.mxu0 %v3889_v44 }
  0x61   :  { %2759 = vmatmul.mubr.msk.f32.gmra.mrb[8].mxu0 %vm97_vm0, %v3780_v59  ;;  %2875 = vmatprep.subr.bf16.mxu1 %v3894_v47 }
  0x62   :  { %2767 = vmatmul.mubr.msk.f32.gmra.mrb[8].mxu1 %vm97_vm0, %v3780_v59  ;;  %484 = vmatprep.mubr.f32.mxu0 %v3626_v0  ;;  %v717_v59 = vld [vmem:[#allocation6 + $0x160] sm:$0xff] }
  0x63   :  { %597 = vmatprep.mubr.f32.mxu1 %v3626_v0  ;;  %2845 = vmatpush1.bf16.msra.mxu0 %v3901_v53  ;;  %v3937_v26 = vpack.c.bf16 %v717_v59, %v713_v14  ;;  %v1471_v14 = vld [vmem:[#allocation6] sm:$0xff] }
  0x64   :  { %2877 = vmatpush1.bf16.msra.mxu1 %v3905_v55  ;;  %2847 = vmatprep.subr.bf16.mxu0 %v3907_v56 }
  0x65   :  { %2760 = vmatmul.mubr.msk.f32.gmra.mrb[6].mxu0 %vm97_vm0, %v3791_v60  ;;  %2879 = vmatprep.subr.bf16.mxu1 %v3912_v5 }
  0x66   :  { %2768 = vmatmul.mubr.msk.f32.gmra.mrb[6].mxu1 %vm97_vm0, %v3791_v60  ;;  %490 = vmatprep.mubr.f32.mxu0 %v3626_v0  ;;  %v725_v60 = vld [vmem:[#allocation6 + $0x1a0] sm:$0xff] }
  0x67   :  { %603 = vmatprep.mubr.f32.mxu1 %v3626_v0  ;;  %2849 = vmatpush1.bf16.msra.mxu0 %v3919_v11  ;;  %v3955_v45 = vpack.c.bf16 %v725_v60, %v721_v30 }
  0x68   :  { %2881 = vmatpush1.bf16.msra.mxu1 %v3923_v12  ;;  %2851 = vmatprep.subr.bf16.mxu0 %v3925_v13 }
  0x69   :  { %2761 = vmatmul.mubr.msk.f32.gmra.mrb[4].mxu0 %vm97_vm0, %v3802_v61  ;;  %2883 = vmatprep.subr.bf16.mxu1 %v3930_v17 }
  0x6a   :  { %2769 = vmatmul.mubr.msk.f32.gmra.mrb[4].mxu1 %vm97_vm0, %v3802_v61  ;;  %496 = vmatprep.mubr.f32.mxu0 %v3626_v0  ;;  %v733_v61 = vld [vmem:[#allocation6 + $0x1e0] sm:$0xff] }
  0x6b   :  { %609 = vmatprep.mubr.f32.mxu1 %v3626_v0  ;;  %2853 = vmatpush1.bf16.msra.mxu0 %v3937_v26  ;;  %v3974_v52 = vpack.c.bf16 %v733_v61, %v729_v48 }
  0x6c   :  { %2885 = vmatpush1.bf16.msra.mxu1 %v3941_v28  ;;  %2855 = vmatprep.subr.bf16.mxu0 %v3943_v29 }
  0x6d   :  { %2762 = vmatmul.mubr.msk.f32.gmra.mrb[2].mxu0 %vm97_vm0, %v3813_v62  ;;  %2887 = vmatprep.subr.bf16.mxu1 %v3948_v31 }
  0x6e   :  { %2770 = vmatmul.mubr.msk.f32.gmra.mrb[2].mxu1 %vm97_vm0, %v3813_v62  ;;  %502 = vmatprep.mubr.f32.mxu0 %v3626_v0  ;;  %v1713_v62 = vsel %vm1706_vm7, 1, %v3627_v1  ;;  %v77_v1 = vlaneseq }
  0x6f   :  { %615 = vmatprep.mubr.f32.mxu1 %v3626_v0  ;;  %2857 = vmatpush1.bf16.msra.mxu0 %v3955_v45 }
  0x70   :  { %2889 = vmatpush1.bf16.msra.mxu1 %v3959_v43  ;;  %2859 = vmatprep.subr.bf16.mxu0 %v3961_v46  ;;  %v4030_v57 = vand.u32 127, %v77_v1  ;;  %v78_v30 = vshrl.u32 %v77_v1, 7 }
  0x71   :  { %2763 = vmatmul.mubr.msk.f32.gmra.mrb[0].mxu0 %vm97_vm0, %v3832_v2  ;;  %2891 = vmatprep.subr.bf16.mxu1 %v3966_v49 }
  0x72   :  { %2771 = vmatmul.mubr.msk.f32.gmra.mrb[0].mxu1 %vm97_vm0, %v3832_v2  ;;  %801 = vmatprep.mubr.f32.mxu0 %v3626_v0  ;;  %vm658_vm9 = vcmp.ge.s32.totalorder %v4030_v57, 32  ;;  %vm659_vm10 = vcmp.lt.s32.totalorder %v4030_v57, 64  ;;  %vm657_vm0 = vcmp.lt.s32.totalorder %v4030_v57, 32  ;;  %v79_v60 = vsub.s32 0, %v78_v30 }
  0x73   :  { %2861 = vmatpush1.bf16.msra.mxu0 %v3974_v52  ;;  %872 = vmatprep.mubr.f32.mxu1 %v3626_v0  ;;  %vm4036_vm11 = vmand %vm658_vm9, %vm659_vm10  ;;  %v83_v36 = vsub.s32 1, %v78_v30  ;;  %v91_v41 = vsub.s32 3, %v78_v30 }
  0x74   :  { %2893 = vmatpush1.bf16.msra.mxu1 %v3979_v3  ;;  %1715 = vperm.xlu1 %3445, %v1713_v62   ;;  %v4116_v37 = vrot.slane %v75_v32, %v79_v60 }
  0x75   :  { %2895 = vmatprep.subr.bf16.mxu0 %v3755_v54  ;;  %2927 = vmatprep.subr.bf16.mxu1 %v3767_v58  ;;  %v4118_v38 = vrot.slane %v75_v32, %v83_v36 }
  0x79   :  { %802 = vmatmul.mubr.f32.vlgmr.msra.gmra.mrb[0].mxu0 %v3626_v0 }
  0x7a   :  { %873 = vmatmul.mubr.f32.vlgmr.msra.gmra.mrb[0].mxu1 %v3626_v0  ;;  %2897 = vmatpush1.bf16.msra.mxu0 %v3850_v15 }
  0x7b   :  { %2929 = vmatpush1.bf16.msra.mxu1 %v3854_v21  ;;  %2899 = vmatprep.subr.bf16.mxu0 %v3852_v20 }
  0x7c   :  { %2931 = vmatprep.subr.bf16.mxu1 %v3858_v23  ;;  %1069 = vmatprep.mubr.f32.mxu0 %v3626_v0 }
  0x7d   :  { %1140 = vmatprep.mubr.f32.mxu1 %v3626_v0 }
  0x7e   :  { %2901 = vmatpush1.bf16.msra.mxu0 %v3863_v27 }
  0x7f   :  { %2933 = vmatpush1.bf16.msra.mxu1 %v3871_v34  ;;  %2903 = vmatprep.subr.bf16.mxu0 %v3869_v33 }
  0x80   :  { %2935 = vmatprep.subr.bf16.mxu1 %v3876_v35 }
  0x82   :  { %2905 = vmatpush1.bf16.msra.mxu0 %v3881_v39 }
  0x83   :  { %2937 = vmatpush1.bf16.msra.mxu1 %v3887_v42  ;;  %2907 = vmatprep.subr.bf16.mxu0 %v3889_v44 }
  0x84   :  { %2939 = vmatprep.subr.bf16.mxu1 %v3894_v47 }
  0x86   :  { %2909 = vmatpush1.bf16.msra.mxu0 %v3901_v53 }
  0x87   :  { %2941 = vmatpush1.bf16.msra.mxu1 %v3905_v55  ;;  %2911 = vmatprep.subr.bf16.mxu0 %v3907_v56 }
  0x88   :  { %2943 = vmatprep.subr.bf16.mxu1 %v3912_v5 }
  0x8a   :  { %2913 = vmatpush1.bf16.msra.mxu0 %v3919_v11 }
  0x8b   :  { %2945 = vmatpush1.bf16.msra.mxu1 %v3923_v12  ;;  %2915 = vmatprep.subr.bf16.mxu0 %v3925_v13 }
  0x8c   :  { %2947 = vmatprep.subr.bf16.mxu1 %v3930_v17 }
  0x8e   :  { %2917 = vmatpush1.bf16.msra.mxu0 %v3937_v26 }
  0x8f   :  { %2949 = vmatpush1.bf16.msra.mxu1 %v3941_v28  ;;  %2919 = vmatprep.subr.bf16.mxu0 %v3943_v29 }
  0x90   :  { %2951 = vmatprep.subr.bf16.mxu1 %v3948_v31 }
  0x92   :  { %2921 = vmatpush1.bf16.msra.mxu0 %v3955_v45 }
  0x93   :  { %2953 = vmatpush1.bf16.msra.mxu1 %v3959_v43  ;;  %2923 = vmatprep.subr.bf16.mxu0 %v3961_v46 }
  0x94   :  { %2955 = vmatprep.subr.bf16.mxu1 %v3966_v49 }
  0x96   :  { %2925 = vmatpush1.bf16.msra.mxu0 %v3974_v52 }
  0x97   :  { %2957 = vmatpush1.bf16.msra.mxu1 %v3979_v3  ;;  %2959 = vmatprep.subr.bf16.mxu0 %v3755_v54  ;;  %v4528_v54 = vmov 0 }
  0x98   :  { %2991 = vmatprep.subr.bf16.mxu1 %v3767_v58 }
  0xba   :  { %v4032_v4 = vpop.permute.xlu0 %913 }
  0xbb   :  { %v1180_v2 = vpop.permute.xlu1 %1179  ;;  %vm4524_vm12 = vcmp.eq.s32.totalorder %v4032_v4, 1 }
  0xbc   :  { %vm4045_vm13 = vmand %vm4036_vm11, %vm4524_vm12  ;;  %vm1181_vm14 = vcmp.eq.s32.totalorder %v1180_v2, 1  ;;  %v4122_v2 = vrot.slane %v75_v32, %v91_v41 }
  0xbd   :  { %v4529_v54 = vsel %vm4045_vm13, 4294967295, %v4528_v54  ;;  %vm2477_vm15 = vmand %vm4036_vm11, %vm1181_vm14 }
  0xbe   :  { %v4049_v58 = vpop.permute.xlu0 %921  ;;  %vm1182_vm1 = vmand %vm657_vm0, %vm1181_vm14 }
  0xbf   :  { %v1186_v7 = vpop.permute.xlu1 %1185  ;;  %vm4523_vm2 = vcmp.eq.s32.totalorder %v4049_v58, 1 }
  0xc0   :  { %vm1187_vm3 = vcmp.eq.s32.totalorder %v1186_v7, 1  ;;  %vm4061_vm4 = vmand %vm657_vm0, %vm4523_vm2  ;;  %v87_v7 = vsub.s32 2, %v78_v30 }
  0xc1   :  { %vm1188_vm6 = vmand %vm4036_vm11, %vm1187_vm3 }
  0xc2   :  { %v1445_v10 = vpop.permute.xlu0 %1444  ;;  %vm4071_vm7 = vmor %vm1182_vm1, %vm1188_vm6 }
  0xc3   :  { %v1451_v9 = vpop.permute.xlu1 %1450  ;;  %vm2476_vm9 = vmand %vm657_vm0, %vm1187_vm3  ;;  %vm1446_vm14 = vcmp.eq.s32.totalorder %v1445_v10, 1  ;;  %v4125_v10 = vrot.slane %v75_v32, %v87_v7 }
  0xc4   :  { %vm1452_vm8 = vcmp.eq.s32.totalorder %v1451_v9, 1  ;;  %vm4077_vm10 = vmor %vm2476_vm9, %vm2477_vm15 }
  0xc5   :  { %vm1453_vm5 = vmand %vm4036_vm11, %vm1452_vm8 }
  0xc6   :  { %vm2223_vm2 = vmand %vm657_vm0, %vm1452_vm8  ;;  %v1710_v18 = vpop.permute.xlu0 %1709 }
  0xc7   :  { %vm1447_vm1 = vmand %vm657_vm0, %vm1446_vm14  ;;  %vm1711_vm12 = vcmp.eq.s32.totalorder %v1710_v18, 1 }
  0xc8   :  { %vm4087_vm6 = vmor %vm1447_vm1, %vm1453_vm5 }
  0xc9   :  { %vm2224_vm3 = vmand %vm4036_vm11, %vm1446_vm14 }
  0xca   :  { %vm4093_vm9 = vmor %vm2223_vm2, %vm2224_vm3 }
  0xcb   :  { %vm1712_vm5 = vmand %vm657_vm0, %vm1711_vm12 }
  0xcc   :  { %vm1971_vm2 = vmand %vm4036_vm11, %vm1711_vm12  ;;  %vm4544_vm12 = vcmp.eq.s32.totalorder %v4032_v4, 1 }
  0xf3   :  { %v1716_v16 = vpop.permute.xlu1 %1715 }
  0xf4   :  { %vm1717_vm15 = vcmp.eq.s32.totalorder %v1716_v16, 1 }
  0xf5   :  { %vm1718_vm8 = vmand %vm4036_vm11, %vm1717_vm15 }
  0xf6   :  { %vm1970_vm13 = vmand %vm657_vm0, %vm1717_vm15  ;;  %vm4545_vm15 = vcmp.eq.s32.totalorder %v4049_v58, 1  ;;  %v1474_v58 = vld [vmem:[#allocation6 + $0x18] sm:$0xff] }
  0xf7   :  { %vm4103_vm1 = vmor %vm1712_vm5, %vm1718_vm8 }
  0xf8   :  { %vm4109_vm14 = vmor %vm1970_vm13, %vm1971_vm2 }
  0xf9   :  { %vm916_vm13 = vmand %vm657_vm0, %vm4544_vm12 }
  0xfa   :  { %vm924_vm3 = vmand %vm4036_vm11, %vm4545_vm15  ;;  %vm4546_vm11 = vnez %v4529_v54 }
  0xfb   :  { %vm925_vm8 = vmor %vm916_vm13, %vm924_vm3 }
  0xfc   :  { %vm4547_vm0 = vmor %vm4061_vm4, %vm4546_vm11 }
 0x14c   :  { %v803_v40 = vpop.f32.mrb[0].mxu0 }
 0x14d   :  { %v3342_v48 = vadd.f32 %v803_v40, %v4116_v37  ;;  %v874_v61 = vpop.f32.mrb[0].mxu1  ;;  %v805_v50 = vpop.f32.mrb[1].mxu0 }
 0x14e   :  { %v3343_v51 = vadd.f32 %v805_v50, %v4118_v38  ;;  %v876_v62 = vpop.f32.mrb[1].mxu1  ;;  %v3358_v18 = vadd.f32 %v874_v61, %v4125_v10 }
 0x14f   :  { %v2772_v63 = vmul.f32 -1.442695, %v3342_v48  ;;  %v3359_v9 = vadd.f32 %v876_v62, %v4122_v2 }
 0x150   :  { %v2773_v1 = vmul.f32 -1.442695, %v3343_v51 }
 0x151   :  { %3446 = vpow2.f32 %v2772_v63  ;;  %v2774_v16 = vmul.f32 -1.442695, %v3359_v9 }
 0x152   :  { %3448 = vpow2.f32 %v2773_v1 }
 0x153   :  { %3450 = vpow2.f32 %v2774_v16 }
 0x154   :  { %3452 = vtanh.f32 %v3358_v18  ;;  %v1478_v18 = vld [vmem:[#allocation6 + $0x38] sm:$0xff] }
 0x15b   :  { %v3447_v60 = vpop.eup %3446 }
 0x15c   :  { %v3449_v36 = vpop.eup %3448  ;;  %v886_v40 = vadd.f32 1.0, %v3447_v60  ;;  %v1475_v60 = vld [vmem:[#allocation6 + $0x20] sm:$0xff] }
 0x15d   :  { %v892_v50 = vadd.f32 1.0, %v3449_v36  ;;  %v3451_v41 = vpop.eup %3450  ;;  %v4202_v36 = vpack.c.bf16 %v1478_v18, %v1474_v58  ;;  %v1510_v58 = vld [vmem:[#allocation6 + $0x138] sm:$0xff]  ;;  %v1503_v18 = vld [vmem:[#allocation6 + $0x100] sm:$0xff] }
 0x15e   :  { %3454 = vrcp.f32 %v886_v40  ;;  %v3453_v48 = vpop.eup %3452  ;;  %v899_v61 = vadd.f32 1.0, %v3451_v41  ;;  %v4204_v40 = vpack.c.bf16 %v1475_v60, %v1471_v14  ;;  %v1477_v41 = vld [vmem:[#allocation6 + $0x30] sm:$0xff]  ;;  %v1507_v14 = vld [vmem:[#allocation6 + $0x120] sm:$0xff] }
 0x15f   :  { %3456 = vrcp.f32 %v892_v50  ;;  %v1473_v50 = vld [vmem:[#allocation6 + $0x10] sm:$0xff] }
 0x160   :  { %3458 = vrcp.f32 %v899_v61  ;;  %v1482_v61 = vld [vmem:[#allocation6 + $0x58] sm:$0xff] }
 0x168   :  { %v3455_v30 = vpop.eup %3454 }
 0x169   :  { %v3457_v32 = vpop.eup %3456  ;;  %v903_v51 = vmul.f32 %v3455_v30, %v3453_v48  ;;  %v4207_v48 = vpack.c.bf16 %v1477_v41, %v1473_v50  ;;  %v1480_v30 = vld [vmem:[#allocation6 + $0x48] sm:$0xff]  ;;  %v4252_v50 = vpack.c.bf16 %v1507_v14, %v1503_v18  ;;  %v1505_v41 = vld [vmem:[#allocation6 + $0x110] sm:$0xff] }
 0x16a   :  { %v902_v62 = vmul.f32 0.0, %v3457_v32  ;;  %v3459_v4 = vpop.eup %3458  ;;  %v1484_v32 = vld [vmem:[#allocation6 + $0x68] sm:$0xff] }
 0x16c   :  { %v904_v63 = vadd.f32 %v903_v51, %v902_v62  ;;  %v4212_v51 = vpack.c.bf16 %v1484_v32, %v1480_v30  ;;  %v1486_v62 = vld [vmem:[#allocation6 + $0x78] sm:$0xff]  ;;  %v1509_v30 = vld [vmem:[#allocation6 + $0x130] sm:$0xff]  ;;  %v1512_v32 = vld [vmem:[#allocation6 + $0x148] sm:$0xff] }
 0x16e   :  { %3460 = vtanh.f32 %v904_v63  ;;  %v4136_v1 = vsel %vm925_vm8, %v904_v63, 0.0  ;;  %v1479_v63 = vld [vmem:[#allocation6 + $0x40] sm:$0xff] }
 0x178   :  { %v3461_v7 = vpop.eup %3460 }
 0x179   :  { %v906_v57 = vmul.f32 %v3461_v7, %v3459_v4  ;;  %v4214_v4 = vpack.c.bf16 %v1486_v62, %v1482_v61  ;;  %v4255_v61 = vpack.c.bf16 %v1509_v30, %v1505_v41  ;;  %v1516_v62 = vld [vmem:[#allocation6 + $0x168] sm:$0xff]  ;;  %v1534_v41 = vld [vmem:[#allocation6 + $0x1f8] sm:$0xff]  ;;  %v1527_v30 = vld [vmem:[#allocation6 + $0x1c0] sm:$0xff] }
 0x17b   :  { %2775 = vmatmul.mubr.msk.f32.vlgmr.msra.gmra.mrb[2].mxu0 %vm925_vm8, %v906_v57  ;;  %2776 = vmatmul.mubr.msk.f32.vlgmr.msra.gmra.mrb[2].mxu1 %vm925_vm8, %v906_v57  ;;  %v4138_v9 = vsel %vm925_vm8, %v906_v57, 0.0  ;;  %v1481_v57 = vld [vmem:[#allocation6 + $0x50] sm:$0xff] }
 0x17c   :  { %2961 = vmatpush1.bf16.msra.mxu0 %v3850_v15  ;;  %2993 = vmatpush1.bf16.msra.mxu1 %v3854_v21  ;;  %928 = vst [vmem:[%s4522_s6] sm:$0xff] %v4138_v9 }
 0x17d   :  { %2963 = vmatprep.subr.bf16.mxu0 %v3852_v20  ;;  %2995 = vmatprep.subr.bf16.mxu1 %v3858_v23 }
 0x17e   :  { %1334 = vmatprep.mubr.f32.mxu0 %v3626_v0  ;;  %1405 = vmatprep.mubr.f32.mxu1 %v3626_v0 }
 0x180   :  { %2965 = vmatpush1.bf16.msra.mxu0 %v3863_v27  ;;  %2997 = vmatpush1.bf16.msra.mxu1 %v3871_v34 }
 0x181   :  { %2967 = vmatprep.subr.bf16.mxu0 %v3869_v33  ;;  %2999 = vmatprep.subr.bf16.mxu1 %v3876_v35 }
 0x184   :  { %2969 = vmatpush1.bf16.msra.mxu0 %v3881_v39  ;;  %3001 = vmatpush1.bf16.msra.mxu1 %v3887_v42 }
 0x185   :  { %2971 = vmatprep.subr.bf16.mxu0 %v3889_v44  ;;  %3003 = vmatprep.subr.bf16.mxu1 %v3894_v47 }
 0x188   :  { %2973 = vmatpush1.bf16.msra.mxu0 %v3901_v53  ;;  %3005 = vmatpush1.bf16.msra.mxu1 %v3905_v55 }
 0x189   :  { %2975 = vmatprep.subr.bf16.mxu0 %v3907_v56  ;;  %3007 = vmatprep.subr.bf16.mxu1 %v3912_v5 }
 0x18c   :  { %2977 = vmatpush1.bf16.msra.mxu0 %v3919_v11  ;;  %3009 = vmatpush1.bf16.msra.mxu1 %v3923_v12 }
 0x18d   :  { %2979 = vmatprep.subr.bf16.mxu0 %v3925_v13  ;;  %3011 = vmatprep.subr.bf16.mxu1 %v3930_v17 }
 0x190   :  { %2981 = vmatpush1.bf16.msra.mxu0 %v3937_v26  ;;  %3013 = vmatpush1.bf16.msra.mxu1 %v3941_v28 }
 0x191   :  { %2983 = vmatprep.subr.bf16.mxu0 %v3943_v29  ;;  %3015 = vmatprep.subr.bf16.mxu1 %v3948_v31 }
 0x194   :  { %2985 = vmatpush1.bf16.msra.mxu0 %v3955_v45  ;;  %3017 = vmatpush1.bf16.msra.mxu1 %v3959_v43 }
 0x195   :  { %2987 = vmatprep.subr.bf16.mxu0 %v3961_v46  ;;  %3019 = vmatprep.subr.bf16.mxu1 %v3966_v49 }
 0x198   :  { %2989 = vmatpush1.bf16.msra.mxu0 %v3974_v52  ;;  %3021 = vmatpush1.bf16.msra.mxu1 %v3979_v3  ;;  %v1472_v3 = vld [vmem:[#allocation6 + $0x8] sm:$0xff] }
 0x199   :  { %v4200_v16 = vpack.c.bf16 %v1476_v6, %v1472_v3  ;;  %3055 = vmatprep.subr.bf16.mxu1 %v4202_v36  ;;  %v1506_v3 = vld [vmem:[#allocation6 + $0x118] sm:$0xff] }
 0x19a   :  { %v4250_v60 = vpack.c.bf16 %v1510_v58, %v1506_v3  ;;  %v1532_v3 = vld [vmem:[#allocation6 + $0x1e8] sm:$0xff]  ;;  %v1530_v58 = vld [vmem:[#allocation6 + $0x1d8] sm:$0xff] }
 0x19b   :  { %3023 = vmatprep.subr.bf16.mxu0 %v4200_v16 }
 0x24e   :  { %v1071_v15 = vpop.f32.mrb[2].mxu0  ;;  %v1142_v20 = vpop.f32.mrb[2].mxu1 }
 0x24f   :  { %v3344_v21 = vadd.f32 %v1071_v15, %v4116_v37  ;;  %v1073_v23 = vpop.f32.mrb[3].mxu0  ;;  %v1144_v27 = vpop.f32.mrb[3].mxu1  ;;  %v3360_v44 = vadd.f32 %v1142_v20, %v4125_v10  ;;  %v1488_v20 = vld [vmem:[#allocation6 + $0x88] sm:$0xff] }
 0x250   :  { %v3345_v33 = vadd.f32 %v1073_v23, %v4118_v38  ;;  %v3361_v39 = vadd.f32 %v1144_v27, %v4122_v2  ;;  %v1490_v23 = vld [vmem:[#allocation6 + $0x98] sm:$0xff] }
 0x251   :  { %v2777_v34 = vmul.f32 -1.442695, %v3344_v21  ;;  %v1492_v21 = vld [vmem:[#allocation6 + $0xa8] sm:$0xff] }
 0x252   :  { %v2778_v35 = vmul.f32 -1.442695, %v3345_v33  ;;  %v2779_v42 = vmul.f32 -1.442695, %v3361_v39  ;;  %v4224_v27 = vpack.c.bf16 %v1492_v21, %v1488_v20  ;;  %v1494_v33 = vld [vmem:[#allocation6 + $0xb8] sm:$0xff]  ;;  %v1511_v20 = vld [vmem:[#allocation6 + $0x140] sm:$0xff] }
 0x253   :  { %3462 = vpow2.f32 %v2777_v34  ;;  %v1487_v34 = vld [vmem:[#allocation6 + $0x80] sm:$0xff]  ;;  %v4226_v39 = vpack.c.bf16 %v1494_v33, %v1490_v23  ;;  %v1513_v23 = vld [vmem:[#allocation6 + $0x150] sm:$0xff] }
 0x254   :  { %3464 = vpow2.f32 %v2778_v35  ;;  %v1491_v35 = vld [vmem:[#allocation6 + $0xa0] sm:$0xff] }
 0x255   :  { %3466 = vpow2.f32 %v2779_v42  ;;  %v4228_v42 = vpack.c.bf16 %v1491_v35, %v1487_v34  ;;  %v1515_v21 = vld [vmem:[#allocation6 + $0x160] sm:$0xff]  ;;  %v1517_v34 = vld [vmem:[#allocation6 + $0x170] sm:$0xff]  ;;  %v1520_v35 = vld [vmem:[#allocation6 + $0x188] sm:$0xff] }
 0x256   :  { %3468 = vtanh.f32 %v3360_v44  ;;  %v1489_v44 = vld [vmem:[#allocation6 + $0x90] sm:$0xff]  ;;  %v4264_v33 = vpack.c.bf16 %v1515_v21, %v1511_v20 }
 0x25d   :  { %v3463_v47 = vpop.eup %3462 }
 0x25e   :  { %v3465_v53 = vpop.eup %3464  ;;  %v1154_v55 = vadd.f32 1.0, %v3463_v47  ;;  %v1493_v47 = vld [vmem:[#allocation6 + $0xb0] sm:$0xff] }
 0x25f   :  { %v1160_v56 = vadd.f32 1.0, %v3465_v53  ;;  %v3467_v5 = vpop.eup %3466  ;;  %v4231_v53 = vpack.c.bf16 %v1493_v47, %v1489_v44  ;;  %v1524_v44 = vld [vmem:[#allocation6 + $0x1a8] sm:$0xff]  ;;  %v4268_v47 = vpack.c.bf16 %v1517_v34, %v1513_v23 }
 0x260   :  { %3470 = vrcp.f32 %v1154_v55  ;;  %v3469_v11 = vpop.eup %3468  ;;  %v1167_v26 = vadd.f32 1.0, %v3467_v5  ;;  %v1496_v55 = vld [vmem:[#allocation6 + $0xc8] sm:$0xff]  ;;  %v1498_v5 = vld [vmem:[#allocation6 + $0xd8] sm:$0xff] }
 0x261   :  { %3472 = vrcp.f32 %v1160_v56  ;;  %v1500_v56 = vld [vmem:[#allocation6 + $0xe8] sm:$0xff] }
 0x262   :  { %3474 = vrcp.f32 %v1167_v26 }
 0x26a   :  { %v3471_v12 = vpop.eup %3470 }
 0x26b   :  { %v3473_v13 = vpop.eup %3472  ;;  %v1171_v17 = vmul.f32 %v3471_v12, %v3469_v11  ;;  %v4236_v11 = vpack.c.bf16 %v1500_v56, %v1496_v55  ;;  %v1502_v12 = vld [vmem:[#allocation6 + $0xf8] sm:$0xff]  ;;  %v4270_v55 = vpack.c.bf16 %v1524_v44, %v1520_v35 }
 0x26c   :  { %v1170_v28 = vmul.f32 %v3473_v13, %v4136_v1  ;;  %v3475_v45 = vpop.eup %3474  ;;  %v1495_v13 = vld [vmem:[#allocation6 + $0xc0] sm:$0xff]  ;;  %v4238_v26 = vpack.c.bf16 %v1502_v12, %v1498_v5  ;;  %v1522_v56 = vld [vmem:[#allocation6 + $0x198] sm:$0xff] }
 0x26d   :  { %v1526_v5 = vld [vmem:[#allocation6 + $0x1b8] sm:$0xff]  ;;  %v1519_v12 = vld [vmem:[#allocation6 + $0x180] sm:$0xff] }
 0x26e   :  { %v1172_v29 = vadd.f32 %v1171_v17, %v1170_v28  ;;  %v1499_v17 = vld [vmem:[#allocation6 + $0xe0] sm:$0xff] }
 0x26f   :  { %v4240_v28 = vpack.c.bf16 %v1499_v17, %v1495_v13  ;;  %v4272_v13 = vpack.c.bf16 %v1526_v5, %v1522_v56  ;;  %v1523_v17 = vld [vmem:[#allocation6 + $0x1a0] sm:$0xff] }
 0x270   :  { %3476 = vtanh.f32 %v1172_v29  ;;  %v4184_v31 = vsel %vm4071_vm7, %v1172_v29, %v4136_v1  ;;  %v1483_v1 = vld [vmem:[#allocation6 + $0x60] sm:$0xff]  ;;  %v1497_v29 = vld [vmem:[#allocation6 + $0xd0] sm:$0xff] }
 0x271   :  { %v4216_v7 = vpack.c.bf16 %v1483_v1, %v1479_v63  ;;  %v1514_v63 = vld [vmem:[#allocation6 + $0x158] sm:$0xff] }
 0x272   :  { %v1518_v1 = vld [vmem:[#allocation6 + $0x178] sm:$0xff] }
 0x27a   :  { %v3477_v43 = vpop.eup %3476 }
 0x27b   :  { %v1174_v46 = vmul.f32 %v3477_v43, %v3475_v45  ;;  %v1501_v45 = vld [vmem:[#allocation6 + $0xf0] sm:$0xff] }
 0x27c   :  { %v4243_v43 = vpack.c.bf16 %v1501_v45, %v1497_v29  ;;  %v1521_v29 = vld [vmem:[#allocation6 + $0x190] sm:$0xff] }
 0x27d   :  { %v4189_v49 = vsel %vm4071_vm7, %v1174_v46, %v4138_v9  ;;  %v1192_v52 = vsel %vm4071_vm7, %v1174_v46, 0.0  ;;  %v1485_v9 = vld [vmem:[#allocation6 + $0x70] sm:$0xff]  ;;  %v1504_v46 = vld [vmem:[#allocation6 + $0x108] sm:$0xff] }
 0x27e   :  { %1193 = vst [vmem:[%s4522_s6 + $0x8] sm:$0xff] %v1192_v52  ;;  %1335 = vmatmul.mubr.f32.vlgmr.msra.gmra.mrb[4].mxu0 %v4189_v49  ;;  %1406 = vmatmul.mubr.f32.vlgmr.msra.gmra.mrb[4].mxu1 %v4189_v49  ;;  %v4219_v15 = vpack.c.bf16 %v1485_v9, %v1481_v57  ;;  %v1508_v52 = vld [vmem:[#allocation6 + $0x128] sm:$0xff]  ;;  %v4259_v57 = vpack.c.bf16 %v1516_v62, %v1512_v32  ;;  %v1525_v45 = vld [vmem:[#allocation6 + $0x1b0] sm:$0xff]  ;;  %v1531_v32 = vld [vmem:[#allocation6 + $0x1e0] sm:$0xff] }
 0x27f   :  { %1599 = vmatprep.mubr.f32.mxu0 %v3626_v0  ;;  %1670 = vmatprep.mubr.f32.mxu1 %v3626_v0  ;;  %v4248_v6 = vpack.c.bf16 %v1508_v52, %v1504_v46  ;;  %v4261_v9 = vpack.c.bf16 %v1518_v1, %v1514_v63  ;;  %v4275_v46 = vpack.c.bf16 %v1523_v17, %v1519_v12  ;;  %v1528_v52 = vld [vmem:[#allocation6 + $0x1c8] sm:$0xff]  ;;  %v1529_v63 = vld [vmem:[#allocation6 + $0x1d0] sm:$0xff] }
 0x280   :  { %3025 = vmatpush1.bf16.msra.mxu0 %v4204_v40  ;;  %3057 = vmatpush1.bf16.msra.mxu1 %v4207_v48  ;;  %v4279_v18 = vpack.c.bf16 %v1525_v45, %v1521_v29  ;;  %v4281_v14 = vpack.c.bf16 %v1532_v3, %v1528_v52  ;;  %v4284_v62 = vpack.c.bf16 %v1534_v41, %v1530_v58  ;;  %v1533_v1 = vld [vmem:[#allocation6 + $0x1f0] sm:$0xff] }
 0x281   :  { %3027 = vmatprep.subr.bf16.mxu0 %v4212_v51  ;;  %3059 = vmatprep.subr.bf16.mxu1 %v4214_v4  ;;  %v4287_v20 = vpack.c.bf16 %v1531_v32, %v1527_v30  ;;  %v4291_v21 = vpack.c.bf16 %v1533_v1, %v1529_v63 }
 0x284   :  { %3029 = vmatpush1.bf16.msra.mxu0 %v4216_v7  ;;  %3061 = vmatpush1.bf16.msra.mxu1 %v4219_v15 }
 0x285   :  { %3031 = vmatprep.subr.bf16.mxu0 %v4224_v27  ;;  %3063 = vmatprep.subr.bf16.mxu1 %v4226_v39 }
 0x288   :  { %3033 = vmatpush1.bf16.msra.mxu0 %v4228_v42  ;;  %3065 = vmatpush1.bf16.msra.mxu1 %v4231_v53 }
 0x289   :  { %3035 = vmatprep.subr.bf16.mxu0 %v4236_v11  ;;  %3067 = vmatprep.subr.bf16.mxu1 %v4238_v26 }
 0x28c   :  { %3037 = vmatpush1.bf16.msra.mxu0 %v4240_v28  ;;  %3069 = vmatpush1.bf16.msra.mxu1 %v4243_v43 }
 0x28d   :  { %3039 = vmatprep.subr.bf16.mxu0 %v4248_v6  ;;  %3071 = vmatprep.subr.bf16.mxu1 %v4250_v60 }
 0x290   :  { %3041 = vmatpush1.bf16.msra.mxu0 %v4252_v50  ;;  %3073 = vmatpush1.bf16.msra.mxu1 %v4255_v61 }
 0x291   :  { %3043 = vmatprep.subr.bf16.mxu0 %v4259_v57  ;;  %3075 = vmatprep.subr.bf16.mxu1 %v4261_v9 }
 0x294   :  { %3045 = vmatpush1.bf16.msra.mxu0 %v4264_v33  ;;  %3077 = vmatpush1.bf16.msra.mxu1 %v4268_v47 }
 0x295   :  { %3047 = vmatprep.subr.bf16.mxu0 %v4270_v55  ;;  %3079 = vmatprep.subr.bf16.mxu1 %v4272_v13 }
 0x298   :  { %3049 = vmatpush1.bf16.msra.mxu0 %v4275_v46  ;;  %3081 = vmatpush1.bf16.msra.mxu1 %v4279_v18 }
 0x299   :  { %3051 = vmatprep.subr.bf16.mxu0 %v4281_v14  ;;  %3083 = vmatprep.subr.bf16.mxu1 %v4284_v62 }
 0x29c   :  { %3053 = vmatpush1.bf16.msra.mxu0 %v4287_v20  ;;  %3085 = vmatpush1.bf16.msra.mxu1 %v4291_v21 }
 0x29d   :  { %3087 = vmatprep.subr.bf16.mxu0 %v4200_v16  ;;  %3119 = vmatprep.subr.bf16.mxu1 %v4202_v36 }
 0x351   :  { %v1336_v23 = vpop.f32.mrb[4].mxu0  ;;  %v1407_v34 = vpop.f32.mrb[4].mxu1 }
 0x352   :  { %v3346_v35 = vadd.f32 %v1336_v23, %v4116_v37  ;;  %v1338_v44 = vpop.f32.mrb[5].mxu0  ;;  %v1409_v56 = vpop.f32.mrb[5].mxu1  ;;  %v3362_v52 = vadd.f32 %v1407_v34, %v4125_v10 }
 0x353   :  { %v3347_v5 = vadd.f32 %v1338_v44, %v4118_v38  ;;  %v3363_v29 = vadd.f32 %v1409_v56, %v4122_v2 }
 0x354   :  { %v2780_v12 = vmul.f32 -1.442695, %v3346_v35 }
 0x355   :  { %v2781_v17 = vmul.f32 -1.442695, %v3347_v5  ;;  %v2782_v45 = vmul.f32 -1.442695, %v3363_v29 }
 0x356   :  { %3478 = vpow2.f32 %v2780_v12 }
 0x357   :  { %3480 = vpow2.f32 %v2781_v17 }
 0x358   :  { %3482 = vpow2.f32 %v2782_v45 }
 0x359   :  { %3484 = vtanh.f32 %v3362_v52 }
 0x360   :  { %v3479_v3 = vpop.eup %3478 }
 0x361   :  { %v3481_v58 = vpop.eup %3480  ;;  %v1419_v41 = vadd.f32 1.0, %v3479_v3 }
 0x362   :  { %v1425_v30 = vadd.f32 1.0, %v3481_v58  ;;  %v3483_v32 = vpop.eup %3482 }
 0x363   :  { %3486 = vrcp.f32 %v1419_v41  ;;  %v3485_v63 = vpop.eup %3484  ;;  %v1432_v44 = vadd.f32 1.0, %v3483_v32 }
 0x364   :  { %3488 = vrcp.f32 %v1425_v30 }
 0x365   :  { %3490 = vrcp.f32 %v1432_v44 }
 0x36d   :  { %v3487_v1 = vpop.eup %3486 }
 0x36e   :  { %v3489_v23 = vpop.eup %3488  ;;  %v1436_v35 = vmul.f32 %v3487_v1, %v3485_v63 }
 0x36f   :  { %v1435_v5 = vmul.f32 %v3489_v23, %v4184_v31  ;;  %v3491_v12 = vpop.eup %3490 }
 0x371   :  { %v1437_v56 = vadd.f32 %v1436_v35, %v1435_v5 }
 0x373   :  { %3492 = vtanh.f32 %v1437_v56  ;;  %v4306_v34 = vsel %vm4087_vm6, %v1437_v56, %v4184_v31 }
 0x37d   :  { %v3493_v17 = vpop.eup %3492 }
 0x37e   :  { %v1439_v29 = vmul.f32 %v3493_v17, %v3491_v12 }
 0x380   :  { %v4311_v45 = vsel %vm4087_vm6, %v1439_v29, %v4189_v49  ;;  %v1457_v52 = vsel %vm4087_vm6, %v1439_v29, 0.0 }
 0x381   :  { %1458 = vst [vmem:[%s4522_s6 + $0x10] sm:$0xff] %v1457_v52  ;;  %1600 = vmatmul.mubr.f32.vlgmr.msra.gmra.mrb[6].mxu0 %v4311_v45  ;;  %1671 = vmatmul.mubr.f32.vlgmr.msra.gmra.mrb[6].mxu1 %v4311_v45 }
 0x382   :  { %3089 = vmatpush1.bf16.msra.mxu0 %v4204_v40  ;;  %3121 = vmatpush1.bf16.msra.mxu1 %v4207_v48 }
 0x383   :  { %3091 = vmatprep.subr.bf16.mxu0 %v4212_v51  ;;  %3123 = vmatprep.subr.bf16.mxu1 %v4214_v4 }
 0x384   :  { %1864 = vmatprep.mubr.f32.mxu0 %v3626_v0  ;;  %1935 = vmatprep.mubr.f32.mxu1 %v3626_v0 }
 0x386   :  { %3093 = vmatpush1.bf16.msra.mxu0 %v4216_v7  ;;  %3125 = vmatpush1.bf16.msra.mxu1 %v4219_v15 }
 0x387   :  { %3095 = vmatprep.subr.bf16.mxu0 %v4224_v27  ;;  %3127 = vmatprep.subr.bf16.mxu1 %v4226_v39 }
 0x38a   :  { %3097 = vmatpush1.bf16.msra.mxu0 %v4228_v42  ;;  %3129 = vmatpush1.bf16.msra.mxu1 %v4231_v53 }
 0x38b   :  { %3099 = vmatprep.subr.bf16.mxu0 %v4236_v11  ;;  %3131 = vmatprep.subr.bf16.mxu1 %v4238_v26 }
 0x38e   :  { %3101 = vmatpush1.bf16.msra.mxu0 %v4240_v28  ;;  %3133 = vmatpush1.bf16.msra.mxu1 %v4243_v43 }
 0x38f   :  { %3103 = vmatprep.subr.bf16.mxu0 %v4248_v6  ;;  %3135 = vmatprep.subr.bf16.mxu1 %v4250_v60 }
 0x392   :  { %3105 = vmatpush1.bf16.msra.mxu0 %v4252_v50  ;;  %3137 = vmatpush1.bf16.msra.mxu1 %v4255_v61 }
 0x393   :  { %3107 = vmatprep.subr.bf16.mxu0 %v4259_v57  ;;  %3139 = vmatprep.subr.bf16.mxu1 %v4261_v9 }
 0x396   :  { %3109 = vmatpush1.bf16.msra.mxu0 %v4264_v33  ;;  %3141 = vmatpush1.bf16.msra.mxu1 %v4268_v47 }
 0x397   :  { %3111 = vmatprep.subr.bf16.mxu0 %v4270_v55  ;;  %3143 = vmatprep.subr.bf16.mxu1 %v4272_v13 }
 0x39a   :  { %3113 = vmatpush1.bf16.msra.mxu0 %v4275_v46  ;;  %3145 = vmatpush1.bf16.msra.mxu1 %v4279_v18 }
 0x39b   :  { %3115 = vmatprep.subr.bf16.mxu0 %v4281_v14  ;;  %3147 = vmatprep.subr.bf16.mxu1 %v4284_v62 }
 0x39e   :  { %3117 = vmatpush1.bf16.msra.mxu0 %v4287_v20  ;;  %3149 = vmatpush1.bf16.msra.mxu1 %v4291_v21 }
 0x39f   :  { %3151 = vmatprep.subr.bf16.mxu0 %v4200_v16  ;;  %3183 = vmatprep.subr.bf16.mxu1 %v4202_v36 }
 0x454   :  { %v1601_v19 = vpop.f32.mrb[6].mxu0  ;;  %v1672_v31 = vpop.f32.mrb[6].mxu1 }
 0x455   :  { %v3348_v49 = vadd.f32 %v1601_v19, %v4116_v37  ;;  %v1603_v3 = vpop.f32.mrb[7].mxu0  ;;  %v1674_v58 = vpop.f32.mrb[7].mxu1  ;;  %v3364_v23 = vadd.f32 %v1672_v31, %v4125_v10 }
 0x456   :  { %v3349_v41 = vadd.f32 %v1603_v3, %v4118_v38  ;;  %v3365_v63 = vadd.f32 %v1674_v58, %v4122_v2 }
 0x457   :  { %v2783_v30 = vmul.f32 -1.442695, %v3348_v49 }
 0x458   :  { %v2784_v32 = vmul.f32 -1.442695, %v3349_v41  ;;  %v2785_v1 = vmul.f32 -1.442695, %v3365_v63 }
 0x459   :  { %3494 = vpow2.f32 %v2783_v30 }
 0x45a   :  { %3496 = vpow2.f32 %v2784_v32 }
 0x45b   :  { %3498 = vpow2.f32 %v2785_v1 }
 0x45c   :  { %3500 = vtanh.f32 %v3364_v23 }
 0x463   :  { %v3495_v35 = vpop.eup %3494 }
 0x464   :  { %v3497_v44 = vpop.eup %3496  ;;  %v1684_v5 = vadd.f32 1.0, %v3495_v35 }
 0x465   :  { %v1690_v56 = vadd.f32 1.0, %v3497_v44  ;;  %v3499_v12 = vpop.eup %3498 }
 0x466   :  { %3502 = vrcp.f32 %v1684_v5  ;;  %v3501_v17 = vpop.eup %3500  ;;  %v1697_v49 = vadd.f32 1.0, %v3499_v12 }
 0x467   :  { %3504 = vrcp.f32 %v1690_v56 }
 0x468   :  { %3506 = vrcp.f32 %v1697_v49 }
 0x470   :  { %v3503_v29 = vpop.eup %3502 }
 0x471   :  { %v3505_v52 = vpop.eup %3504  ;;  %v1701_v19 = vmul.f32 %v3503_v29, %v3501_v17 }
 0x472   :  { %v1700_v3 = vmul.f32 %v3505_v52, %v4306_v34  ;;  %v3507_v41 = vpop.eup %3506 }
 0x474   :  { %v1702_v58 = vadd.f32 %v1701_v19, %v1700_v3 }
 0x476   :  { %3508 = vtanh.f32 %v1702_v58  ;;  %v4362_v31 = vsel %vm4103_vm1, %v1702_v58, %v4306_v34 }
 0x480   :  { %v3509_v30 = vpop.eup %3508 }
 0x481   :  { %v1704_v32 = vmul.f32 %v3509_v30, %v3507_v41 }
 0x483   :  { %v4367_v63 = vsel %vm4103_vm1, %v1704_v32, %v4311_v45  ;;  %v1722_v1 = vsel %vm4103_vm1, %v1704_v32, 0.0 }
 0x484   :  { %1723 = vst [vmem:[%s4522_s6 + $0x18] sm:$0xff] %v1722_v1  ;;  %1865 = vmatmul.mubr.f32.vlgmr.msra.gmra.mrb[8].mxu0 %v4367_v63  ;;  %1936 = vmatmul.mubr.f32.vlgmr.msra.gmra.mrb[8].mxu1 %v4367_v63 }
 0x485   :  { %3153 = vmatpush1.bf16.msra.mxu0 %v4204_v40  ;;  %3185 = vmatpush1.bf16.msra.mxu1 %v4207_v48 }
 0x486   :  { %3155 = vmatprep.subr.bf16.mxu0 %v4212_v51  ;;  %3187 = vmatprep.subr.bf16.mxu1 %v4214_v4 }
 0x487   :  { %2117 = vmatprep.mubr.f32.mxu0 %v3626_v0  ;;  %2188 = vmatprep.mubr.f32.mxu1 %v3626_v0 }
 0x489   :  { %3157 = vmatpush1.bf16.msra.mxu0 %v4216_v7  ;;  %3189 = vmatpush1.bf16.msra.mxu1 %v4219_v15 }
 0x48a   :  { %3159 = vmatprep.subr.bf16.mxu0 %v4224_v27  ;;  %3191 = vmatprep.subr.bf16.mxu1 %v4226_v39 }
 0x48d   :  { %3161 = vmatpush1.bf16.msra.mxu0 %v4228_v42  ;;  %3193 = vmatpush1.bf16.msra.mxu1 %v4231_v53 }
 0x48e   :  { %3163 = vmatprep.subr.bf16.mxu0 %v4236_v11  ;;  %3195 = vmatprep.subr.bf16.mxu1 %v4238_v26 }
 0x491   :  { %3165 = vmatpush1.bf16.msra.mxu0 %v4240_v28  ;;  %3197 = vmatpush1.bf16.msra.mxu1 %v4243_v43 }
 0x492   :  { %3167 = vmatprep.subr.bf16.mxu0 %v4248_v6  ;;  %3199 = vmatprep.subr.bf16.mxu1 %v4250_v60 }
 0x495   :  { %3169 = vmatpush1.bf16.msra.mxu0 %v4252_v50  ;;  %3201 = vmatpush1.bf16.msra.mxu1 %v4255_v61 }
 0x496   :  { %3171 = vmatprep.subr.bf16.mxu0 %v4259_v57  ;;  %3203 = vmatprep.subr.bf16.mxu1 %v4261_v9 }
 0x499   :  { %3173 = vmatpush1.bf16.msra.mxu0 %v4264_v33  ;;  %3205 = vmatpush1.bf16.msra.mxu1 %v4268_v47 }
 0x49a   :  { %3175 = vmatprep.subr.bf16.mxu0 %v4270_v55  ;;  %3207 = vmatprep.subr.bf16.mxu1 %v4272_v13 }
 0x49d   :  { %3177 = vmatpush1.bf16.msra.mxu0 %v4275_v46  ;;  %3209 = vmatpush1.bf16.msra.mxu1 %v4279_v18 }
 0x49e   :  { %3179 = vmatprep.subr.bf16.mxu0 %v4281_v14  ;;  %3211 = vmatprep.subr.bf16.mxu1 %v4284_v62 }
 0x4a1   :  { %3181 = vmatpush1.bf16.msra.mxu0 %v4287_v20  ;;  %3213 = vmatpush1.bf16.msra.mxu1 %v4291_v21 }
 0x4a2   :  { %3215 = vmatprep.subr.bf16.mxu0 %v4200_v16  ;;  %3247 = vmatprep.subr.bf16.mxu1 %v4202_v36 }
 0x557   :  { %v1866_v24 = vpop.f32.mrb[8].mxu0  ;;  %v1937_v34 = vpop.f32.mrb[8].mxu1 }
 0x558   :  { %v3350_v45 = vadd.f32 %v1866_v24, %v4116_v37  ;;  %v1868_v23 = vpop.f32.mrb[9].mxu0  ;;  %v1939_v35 = vpop.f32.mrb[9].mxu1  ;;  %v3366_v29 = vadd.f32 %v1937_v34, %v4125_v10 }
 0x559   :  { %v3351_v44 = vadd.f32 %v1868_v23, %v4118_v38  ;;  %v3367_v12 = vadd.f32 %v1939_v35, %v4122_v2 }
 0x55a   :  { %v2786_v5 = vmul.f32 -1.442695, %v3350_v45 }
 0x55b   :  { %v2787_v56 = vmul.f32 -1.442695, %v3351_v44  ;;  %v2788_v17 = vmul.f32 -1.442695, %v3367_v12  ;;  %v2495_v12 = vld [vmem:[#allocation6] sm:$0xff] }
 0x55c   :  { %3510 = vpow2.f32 %v2786_v5 }
 0x55d   :  { %3512 = vpow2.f32 %v2787_v56  ;;  %v2502_v56 = vld [vmem:[#allocation6 + $0x38] sm:$0xff] }
 0x55e   :  { %3514 = vpow2.f32 %v2788_v17 }
 0x55f   :  { %3516 = vtanh.f32 %v3366_v29  ;;  %v3280_v29 = vpack.c.bf16 %v2499_v22, %v2495_v12  ;;  %v2540_v22 = vld [vmem:[#allocation6 + $0x168] sm:$0xff] }
 0x566   :  { %v3511_v16 = vpop.eup %3510 }
 0x567   :  { %v3513_v52 = vpop.eup %3512  ;;  %v1949_v36 = vadd.f32 1.0, %v3511_v16  ;;  %v2497_v16 = vld [vmem:[#allocation6 + $0x10] sm:$0xff] }
 0x568   :  { %v1955_v19 = vadd.f32 1.0, %v3513_v52  ;;  %v3515_v49 = vpop.eup %3514  ;;  %v2501_v52 = vld [vmem:[#allocation6 + $0x30] sm:$0xff] }
 0x569   :  { %3518 = vrcp.f32 %v1949_v36  ;;  %v3517_v3 = vpop.eup %3516  ;;  %v1962_v32 = vadd.f32 1.0, %v3515_v49  ;;  %v3312_v36 = vpack.c.bf16 %v2501_v52, %v2497_v16  ;;  %v2508_v49 = vld [vmem:[#allocation6 + $0x68] sm:$0xff] }
 0x56a   :  { %3520 = vrcp.f32 %v1955_v19  ;;  %v2504_v19 = vld [vmem:[#allocation6 + $0x48] sm:$0xff] }
 0x56b   :  { %3522 = vrcp.f32 %v1962_v32 }
 0x573   :  { %v3519_v58 = vpop.eup %3518 }
 0x574   :  { %v3521_v41 = vpop.eup %3520  ;;  %v1966_v30 = vmul.f32 %v3519_v58, %v3517_v3  ;;  %v2506_v3 = vld [vmem:[#allocation6 + $0x58] sm:$0xff] }
 0x575   :  { %v1965_v1 = vmul.f32 %v3521_v41, %v4362_v31  ;;  %v3523_v45 = vpop.eup %3522  ;;  %v2510_v58 = vld [vmem:[#allocation6 + $0x78] sm:$0xff]  ;;  %v2503_v41 = vld [vmem:[#allocation6 + $0x40] sm:$0xff] }
 0x576   :  { %v3314_v32 = vpack.c.bf16 %v2510_v58, %v2506_v3  ;;  %v2544_v58 = vld [vmem:[#allocation6 + $0x188] sm:$0xff] }
 0x577   :  { %v1967_v24 = vadd.f32 %v1966_v30, %v1965_v1  ;;  %v2507_v30 = vld [vmem:[#allocation6 + $0x60] sm:$0xff] }
 0x578   :  { %v3284_v1 = vpack.c.bf16 %v2507_v30, %v2503_v41  ;;  %v2548_v41 = vld [vmem:[#allocation6 + $0x1a8] sm:$0xff] }
 0x579   :  { %3524 = vtanh.f32 %v1967_v24  ;;  %v4418_v34 = vsel %vm4109_vm14, %v1967_v24, %v4362_v31  ;;  %v2498_v31 = vld [vmem:[#allocation6 + $0x18] sm:$0xff]  ;;  %v2505_v24 = vld [vmem:[#allocation6 + $0x50] sm:$0xff] }
 0x57a   :  { %v3310_v17 = vpack.c.bf16 %v2502_v56, %v2498_v31  ;;  %v2529_v31 = vld [vmem:[#allocation6 + $0x110] sm:$0xff]  ;;  %v2536_v56 = vld [vmem:[#allocation6 + $0x148] sm:$0xff] }
 0x57b   :  { %v3298_v16 = vpack.c.bf16 %v2540_v22, %v2536_v56 }
 0x583   :  { %v3525_v23 = vpop.eup %3524 }
 0x584   :  { %v1969_v35 = vmul.f32 %v3525_v23, %v3523_v45  ;;  %v2512_v23 = vld [vmem:[#allocation6 + $0x88] sm:$0xff] }
 0x586   :  { %v4423_v44 = vsel %vm4109_vm14, %v1969_v35, %v4367_v63  ;;  %v1975_v5 = vsel %vm4109_vm14, %v1969_v35, 0.0  ;;  %v2516_v35 = vld [vmem:[#allocation6 + $0xa8] sm:$0xff] }
 0x587   :  { %1976 = vst [vmem:[%s4522_s6 + $0x20] sm:$0xff] %v1975_v5  ;;  %2118 = vmatmul.mubr.f32.vlgmr.msra.gmra.mrb[10].mxu0 %v4423_v44  ;;  %2189 = vmatmul.mubr.f32.vlgmr.msra.gmra.mrb[10].mxu1 %v4423_v44  ;;  %v3286_v5 = vpack.c.bf16 %v2516_v35, %v2512_v23  ;;  %v2547_v23 = vld [vmem:[#allocation6 + $0x1a0] sm:$0xff]  ;;  %v2545_v35 = vld [vmem:[#allocation6 + $0x190] sm:$0xff] }
 0x588   :  { %3217 = vmatpush1.bf16.msra.mxu0 %v4204_v40  ;;  %3249 = vmatpush1.bf16.msra.mxu1 %v4207_v48 }
 0x589   :  { %3219 = vmatprep.subr.bf16.mxu0 %v4212_v51  ;;  %3251 = vmatprep.subr.bf16.mxu1 %v4214_v4 }
 0x58a   :  { %2370 = vmatprep.mubr.f32.mxu0 %v3626_v0  ;;  %2441 = vmatprep.mubr.f32.mxu1 %v3626_v0 }
 0x58c   :  { %3221 = vmatpush1.bf16.msra.mxu0 %v4216_v7  ;;  %3253 = vmatpush1.bf16.msra.mxu1 %v4219_v15 }
 0x58d   :  { %3223 = vmatprep.subr.bf16.mxu0 %v4224_v27  ;;  %3255 = vmatprep.subr.bf16.mxu1 %v4226_v39 }
 0x590   :  { %3225 = vmatpush1.bf16.msra.mxu0 %v4228_v42  ;;  %3257 = vmatpush1.bf16.msra.mxu1 %v4231_v53 }
 0x591   :  { %3227 = vmatprep.subr.bf16.mxu0 %v4236_v11  ;;  %3259 = vmatprep.subr.bf16.mxu1 %v4238_v26 }
 0x594   :  { %3229 = vmatpush1.bf16.msra.mxu0 %v4240_v28  ;;  %3261 = vmatpush1.bf16.msra.mxu1 %v4243_v43 }
 0x595   :  { %3231 = vmatprep.subr.bf16.mxu0 %v4248_v6  ;;  %3263 = vmatprep.subr.bf16.mxu1 %v4250_v60 }
 0x598   :  { %3233 = vmatpush1.bf16.msra.mxu0 %v4252_v50  ;;  %3265 = vmatpush1.bf16.msra.mxu1 %v4255_v61 }
 0x599   :  { %3235 = vmatprep.subr.bf16.mxu0 %v4259_v57  ;;  %3267 = vmatprep.subr.bf16.mxu1 %v4261_v9 }
 0x59c   :  { %3237 = vmatpush1.bf16.msra.mxu0 %v4264_v33  ;;  %3269 = vmatpush1.bf16.msra.mxu1 %v4268_v47 }
 0x59d   :  { %3239 = vmatprep.subr.bf16.mxu0 %v4270_v55  ;;  %3271 = vmatprep.subr.bf16.mxu1 %v4272_v13 }
 0x5a0   :  { %3241 = vmatpush1.bf16.msra.mxu0 %v4275_v46  ;;  %3273 = vmatpush1.bf16.msra.mxu1 %v4279_v18 }
 0x5a1   :  { %3243 = vmatprep.subr.bf16.mxu0 %v4281_v14  ;;  %3275 = vmatprep.subr.bf16.mxu1 %v4284_v62 }
 0x5a4   :  { %3245 = vmatpush1.bf16.msra.mxu0 %v4287_v20  ;;  %3277 = vmatpush1.bf16.msra.mxu1 %v4291_v21  ;;  %v2496_v20 = vld [vmem:[#allocation6 + $0x8] sm:$0xff] }
 0x5a5   :  { %v2500_v21 = vld [vmem:[#allocation6 + $0x28] sm:$0xff]  ;;  %3311 = vmatprep.subr.bf16.mxu1 %v3310_v17  ;;  %v2538_v17 = vld [vmem:[#allocation6 + $0x158] sm:$0xff] }
 0x5a6   :  { %v3278_v63 = vpack.c.bf16 %v2500_v21, %v2496_v20 }
 0x5a8   :  { %3279 = vmatprep.subr.bf16.mxu0 %v3278_v63  ;;  %v2533_v63 = vld [vmem:[#allocation6 + $0x130] sm:$0xff] }
 0x5a9   :  { %v3328_v12 = vpack.c.bf16 %v2533_v63, %v2529_v31 }
 0x65a   :  { %v2119_v25 = vpop.f32.mrb[10].mxu0  ;;  %v2190_v40 = vpop.f32.mrb[10].mxu1 }
 0x65b   :  { %v3352_v48 = vadd.f32 %v2119_v25, %v4116_v37  ;;  %v2121_v51 = vpop.f32.mrb[11].mxu0  ;;  %v2192_v4 = vpop.f32.mrb[11].mxu1  ;;  %v3368_v53 = vadd.f32 %v2190_v40, %v4125_v10  ;;  %v2518_v25 = vld [vmem:[#allocation6 + $0xb8] sm:$0xff]  ;;  %v2511_v40 = vld [vmem:[#allocation6 + $0x80] sm:$0xff] }
 0x65c   :  { %v3353_v7 = vadd.f32 %v2121_v51, %v4118_v38  ;;  %v3369_v39 = vadd.f32 %v2192_v4, %v4122_v2 }
 0x65d   :  { %v2789_v15 = vmul.f32 -1.442695, %v3352_v48  ;;  %v2515_v48 = vld [vmem:[#allocation6 + $0xa0] sm:$0xff] }
 0x65e   :  { %v2790_v27 = vmul.f32 -1.442695, %v3353_v7  ;;  %v2791_v42 = vmul.f32 -1.442695, %v3369_v39  ;;  %v3288_v4 = vpack.c.bf16 %v2515_v48, %v2511_v40  ;;  %v2513_v7 = vld [vmem:[#allocation6 + $0x90] sm:$0xff]  ;;  %v2520_v39 = vld [vmem:[#allocation6 + $0xc8] sm:$0xff] }
 0x65f   :  { %3526 = vpow2.f32 %v2789_v15  ;;  %v2517_v15 = vld [vmem:[#allocation6 + $0xb0] sm:$0xff]  ;;  %v2556_v40 = vld [vmem:[#allocation6 + $0x1e8] sm:$0xff]  ;;  %v2554_v48 = vld [vmem:[#allocation6 + $0x1d8] sm:$0xff] }
 0x660   :  { %3528 = vpow2.f32 %v2790_v27  ;;  %v3320_v27 = vpack.c.bf16 %v2517_v15, %v2513_v7  ;;  %v2558_v7 = vld [vmem:[#allocation6 + $0x1f8] sm:$0xff]  ;;  %v2551_v15 = vld [vmem:[#allocation6 + $0x1c0] sm:$0xff] }
 0x661   :  { %3530 = vpow2.f32 %v2791_v42  ;;  %v2524_v42 = vld [vmem:[#allocation6 + $0xe8] sm:$0xff] }
 0x662   :  { %3532 = vtanh.f32 %v3368_v53  ;;  %v2522_v53 = vld [vmem:[#allocation6 + $0xd8] sm:$0xff] }
 0x669   :  { %v3527_v11 = vpop.eup %3526 }
 0x66a   :  { %v3529_v26 = vpop.eup %3528  ;;  %v2202_v28 = vadd.f32 1.0, %v3527_v11  ;;  %v3290_v11 = vpack.c.bf16 %v2524_v42, %v2520_v39  ;;  %v3338_v39 = vpack.c.bf16 %v2558_v7, %v2554_v48  ;;  %v2553_v42 = vld [vmem:[#allocation6 + $0x1d0] sm:$0xff] }
 0x66b   :  { %v2208_v43 = vadd.f32 1.0, %v3529_v26  ;;  %v3531_v6 = vpop.eup %3530  ;;  %v2526_v26 = vld [vmem:[#allocation6 + $0xf8] sm:$0xff] }
 0x66c   :  { %3534 = vrcp.f32 %v2202_v28  ;;  %v3533_v60 = vpop.eup %3532  ;;  %v2215_v9 = vadd.f32 1.0, %v3531_v6  ;;  %v2519_v28 = vld [vmem:[#allocation6 + $0xc0] sm:$0xff]  ;;  %v3322_v6 = vpack.c.bf16 %v2526_v26, %v2522_v53  ;;  %v2557_v53 = vld [vmem:[#allocation6 + $0x1f0] sm:$0xff] }
 0x66d   :  { %3536 = vrcp.f32 %v2208_v43  ;;  %v2523_v43 = vld [vmem:[#allocation6 + $0xe0] sm:$0xff]  ;;  %v3340_v26 = vpack.c.bf16 %v2557_v53, %v2553_v42 }
 0x66e   :  { %3538 = vrcp.f32 %v2215_v9  ;;  %v2528_v9 = vld [vmem:[#allocation6 + $0x108] sm:$0xff] }
 0x676   :  { %v3535_v50 = vpop.eup %3534 }
 0x677   :  { %v3537_v61 = vpop.eup %3536  ;;  %v2219_v57 = vmul.f32 %v3535_v50, %v3533_v60  ;;  %v3292_v60 = vpack.c.bf16 %v2523_v43, %v2519_v28  ;;  %v2521_v50 = vld [vmem:[#allocation6 + $0xd0] sm:$0xff] }
 0x678   :  { %v2218_v33 = vmul.f32 %v3537_v61, %v4418_v34  ;;  %v3539_v13 = vpop.eup %3538  ;;  %v2525_v61 = vld [vmem:[#allocation6 + $0xf0] sm:$0xff] }
 0x67a   :  { %v2220_v47 = vadd.f32 %v2219_v57, %v2218_v33  ;;  %v3324_v57 = vpack.c.bf16 %v2525_v61, %v2521_v50  ;;  %v2532_v33 = vld [vmem:[#allocation6 + $0x128] sm:$0xff] }
 0x67c   :  { %3540 = vtanh.f32 %v2220_v47  ;;  %v4472_v55 = vsel %vm4093_vm9, %v2220_v47, %v4418_v34  ;;  %v2509_v34 = vld [vmem:[#allocation6 + $0x70] sm:$0xff]  ;;  %v2530_v47 = vld [vmem:[#allocation6 + $0x118] sm:$0xff] }
 0x67d   :  { %v3316_v45 = vpack.c.bf16 %v2509_v34, %v2505_v24  ;;  %v2550_v24 = vld [vmem:[#allocation6 + $0x1b8] sm:$0xff]  ;;  %v2543_v34 = vld [vmem:[#allocation6 + $0x180] sm:$0xff] }
 0x686   :  { %v3541_v46 = vpop.eup %3540 }
 0x687   :  { %v2222_v18 = vmul.f32 %v3541_v46, %v3539_v13  ;;  %v3294_v13 = vpack.c.bf16 %v2532_v33, %v2528_v9  ;;  %v2534_v46 = vld [vmem:[#allocation6 + $0x138] sm:$0xff] }
 0x688   :  { %v3326_v20 = vpack.c.bf16 %v2534_v46, %v2530_v47 }
 0x689   :  { %v4477_v14 = vsel %vm4093_vm9, %v2222_v18, %v4423_v44  ;;  %v2228_v62 = vsel %vm4093_vm9, %v2222_v18, 0.0  ;;  %v2514_v44 = vld [vmem:[#allocation6 + $0x98] sm:$0xff]  ;;  %v2527_v18 = vld [vmem:[#allocation6 + $0x100] sm:$0xff] }
 0x68a   :  { %2229 = vst [vmem:[%s4522_s6 + $0x28] sm:$0xff] %v2228_v62  ;;  %2371 = vmatmul.mubr.f32.vlgmr.msra.gmra.mrb[12].mxu0 %v4477_v14  ;;  %2442 = vmatmul.mubr.f32.vlgmr.msra.gmra.mrb[12].mxu1 %v4477_v14  ;;  %v3318_v51 = vpack.c.bf16 %v2518_v25, %v2514_v44  ;;  %v2531_v62 = vld [vmem:[#allocation6 + $0x120] sm:$0xff]  ;;  %v2549_v44 = vld [vmem:[#allocation6 + $0x1b0] sm:$0xff]  ;;  %v2552_v25 = vld [vmem:[#allocation6 + $0x1c8] sm:$0xff] }
 0x68b   :  { %2623 = vmatprep.mubr.f32.mxu0 %v3626_v0  ;;  %2694 = vmatprep.mubr.f32.mxu1 %v3626_v0  ;;  %v3282_v0 = vpack.c.bf16 %v2508_v49, %v2504_v19  ;;  %v3296_v21 = vpack.c.bf16 %v2531_v62, %v2527_v18  ;;  %v2539_v19 = vld [vmem:[#allocation6 + $0x160] sm:$0xff]  ;;  %v2537_v49 = vld [vmem:[#allocation6 + $0x150] sm:$0xff] }
 0x68c   :  { %3281 = vmatpush1.bf16.msra.mxu0 %v3280_v29  ;;  %3313 = vmatpush1.bf16.msra.mxu1 %v3312_v36  ;;  %v2542_v29 = vld [vmem:[#allocation6 + $0x178] sm:$0xff]  ;;  %v2535_v36 = vld [vmem:[#allocation6 + $0x140] sm:$0xff] }
 0x68d   :  { %3283 = vmatprep.subr.bf16.mxu0 %v3282_v0  ;;  %3315 = vmatprep.subr.bf16.mxu1 %v3314_v32  ;;  %v3330_v52 = vpack.c.bf16 %v2542_v29, %v2538_v17  ;;  %v3300_v3 = vpack.c.bf16 %v2539_v19, %v2535_v36  ;;  %v2541_v0 = vld [vmem:[#allocation6 + $0x170] sm:$0xff]  ;;  %v3302_v32 = vpack.c.bf16 %v2548_v41, %v2544_v58 }
 0x68e   :  { %v3332_v30 = vpack.c.bf16 %v2541_v0, %v2537_v49 }
 0x690   :  { %3285 = vmatpush1.bf16.msra.mxu0 %v3284_v1  ;;  %3317 = vmatpush1.bf16.msra.mxu1 %v3316_v45  ;;  %v2546_v1 = vld [vmem:[#allocation6 + $0x198] sm:$0xff] }
 0x691   :  { %3287 = vmatprep.subr.bf16.mxu0 %v3286_v5  ;;  %3319 = vmatprep.subr.bf16.mxu1 %v3318_v51  ;;  %v3334_v45 = vpack.c.bf16 %v2550_v24, %v2546_v1  ;;  %v3304_v5 = vpack.c.bf16 %v2547_v23, %v2543_v34  ;;  %v3336_v51 = vpack.c.bf16 %v2549_v44, %v2545_v35 }
 0x694   :  { %3289 = vmatpush1.bf16.msra.mxu0 %v3288_v4  ;;  %3321 = vmatpush1.bf16.msra.mxu1 %v3320_v27  ;;  %v3306_v4 = vpack.c.bf16 %v2556_v40, %v2552_v25  ;;  %v2555_v27 = vld [vmem:[#allocation6 + $0x1e0] sm:$0xff] }
 0x695   :  { %3291 = vmatprep.subr.bf16.mxu0 %v3290_v11  ;;  %3323 = vmatprep.subr.bf16.mxu1 %v3322_v6  ;;  %v3308_v11 = vpack.c.bf16 %v2555_v27, %v2551_v15 }
 0x698   :  { %3293 = vmatpush1.bf16.msra.mxu0 %v3292_v60  ;;  %3325 = vmatpush1.bf16.msra.mxu1 %v3324_v57 }
 0x699   :  { %3295 = vmatprep.subr.bf16.mxu0 %v3294_v13  ;;  %3327 = vmatprep.subr.bf16.mxu1 %v3326_v20 }
 0x69c   :  { %3297 = vmatpush1.bf16.msra.mxu0 %v3296_v21  ;;  %3329 = vmatpush1.bf16.msra.mxu1 %v3328_v12 }
 0x69d   :  { %3299 = vmatprep.subr.bf16.mxu0 %v3298_v16  ;;  %3331 = vmatprep.subr.bf16.mxu1 %v3330_v52 }
 0x6a0   :  { %3301 = vmatpush1.bf16.msra.mxu0 %v3300_v3  ;;  %3333 = vmatpush1.bf16.msra.mxu1 %v3332_v30 }
 0x6a1   :  { %3303 = vmatprep.subr.bf16.mxu0 %v3302_v32  ;;  %3335 = vmatprep.subr.bf16.mxu1 %v3334_v45 }
 0x6a4   :  { %3305 = vmatpush1.bf16.msra.mxu0 %v3304_v5  ;;  %3337 = vmatpush1.bf16.msra.mxu1 %v3336_v51 }
 0x6a5   :  { %3307 = vmatprep.subr.bf16.mxu0 %v3306_v4  ;;  %3339 = vmatprep.subr.bf16.mxu1 %v3338_v39 }
 0x6a8   :  { %3309 = vmatpush1.bf16.msra.mxu0 %v3308_v11  ;;  %3341 = vmatpush1.bf16.msra.mxu1 %v3340_v26 }
 0x75d   :  { %v2372_v28 = vpop.f32.mrb[12].mxu0  ;;  %v2443_v43 = vpop.f32.mrb[12].mxu1 }
 0x75e   :  { %v3354_v6 = vadd.f32 %v2372_v28, %v4116_v37  ;;  %v2374_v60 = vpop.f32.mrb[13].mxu0  ;;  %v2445_v50 = vpop.f32.mrb[13].mxu1  ;;  %v3370_v13 = vadd.f32 %v2443_v43, %v4125_v10 }
 0x75f   :  { %v3355_v61 = vadd.f32 %v2374_v60, %v4118_v38  ;;  %v3371_v33 = vadd.f32 %v2445_v50, %v4122_v2 }
 0x760   :  { %v2792_v57 = vmul.f32 -1.442695, %v3354_v6 }
 0x761   :  { %v2793_v9 = vmul.f32 -1.442695, %v3355_v61  ;;  %v2794_v47 = vmul.f32 -1.442695, %v3371_v33 }
 0x762   :  { %3542 = vpow2.f32 %v2792_v57 }
 0x763   :  { %3544 = vpow2.f32 %v2793_v9 }
 0x764   :  { %3546 = vpow2.f32 %v2794_v47 }
 0x765   :  { %3548 = vtanh.f32 %v3370_v13 }
 0x76c   :  { %v3543_v46 = vpop.eup %3542 }
 0x76d   :  { %v3545_v18 = vpop.eup %3544  ;;  %v2455_v62 = vadd.f32 1.0, %v3543_v46 }
 0x76e   :  { %v2461_v20 = vadd.f32 1.0, %v3545_v18  ;;  %v3547_v21 = vpop.eup %3546 }
 0x76f   :  { %3550 = vrcp.f32 %v2455_v62  ;;  %v3549_v31 = vpop.eup %3548  ;;  %v2468_v22 = vadd.f32 1.0, %v3547_v21 }
 0x770   :  { %3552 = vrcp.f32 %v2461_v20 }
 0x771   :  { %3554 = vrcp.f32 %v2468_v22 }
 0x779   :  { %v3551_v63 = vpop.eup %3550 }
 0x77a   :  { %v3553_v56 = vpop.eup %3552  ;;  %v2472_v12 = vmul.f32 %v3551_v63, %v3549_v31 }
 0x77b   :  { %v2471_v17 = vmul.f32 %v3553_v56, %v4472_v55  ;;  %v3555_v52 = vpop.eup %3554 }
 0x77d   :  { %v2473_v29 = vadd.f32 %v2472_v12, %v2471_v17 }
 0x77f   :  { %3556 = vtanh.f32 %v2473_v29  ;;  %v2480_v16 = vsel %vm4077_vm10, %v2473_v29, %v4472_v55 }
 0x789   :  { %v3557_v36 = vpop.eup %3556 }
 0x78a   :  { %v2475_v19 = vmul.f32 %v3557_v36, %v3555_v52 }
 0x78c   :  { %v2479_v49 = vsel %vm4077_vm10, %v2475_v19, %v4477_v14  ;;  %v2481_v3 = vsel %vm4077_vm10, %v2475_v19, 0.0 }
 0x78d   :  { %2482 = vst [vmem:[%s4522_s6 + $0x30] sm:$0xff] %v2481_v3  ;;  %2624 = vmatmul.mubr.f32.vlgmr.msra.gmra.mrb[14].mxu0 %v2479_v49  ;;  %2695 = vmatmul.mubr.f32.vlgmr.msra.gmra.mrb[14].mxu1 %v2479_v49 }
 0x860   :  { %v2625_v0 = vpop.f32.mrb[14].mxu0  ;;  %v2696_v58 = vpop.f32.mrb[14].mxu1 }
 0x861   :  { %v3356_v55 = vadd.f32 %v2625_v0, %v4116_v37  ;;  %v2627_v41 = vpop.f32.mrb[15].mxu0  ;;  %v2698_v30 = vpop.f32.mrb[15].mxu1  ;;  %v3372_v34 = vadd.f32 %v2696_v58, %v4125_v10 }
 0x862   :  { %v3357_v32 = vadd.f32 %v2627_v41, %v4118_v38  ;;  %v3373_v59 = vadd.f32 %v2698_v30, %v4122_v2 }
 0x863   :  { %v2795_v1 = vmul.f32 -1.442695, %v3356_v55 }
 0x864   :  { %v2796_v24 = vmul.f32 -1.442695, %v3357_v32  ;;  %v2797_v14 = vmul.f32 -1.442695, %v3373_v59 }
 0x865   :  { %3558 = vpow2.f32 %v2795_v1 }
 0x866   :  { %3560 = vpow2.f32 %v2796_v24 }
 0x867   :  { %3562 = vpow2.f32 %v2797_v14 }
 0x868   :  { %3564 = vtanh.f32 %v3372_v34 }
 0x86f   :  { %v3559_v45 = vpop.eup %3558 }
 0x870   :  { %v3561_v23 = vpop.eup %3560  ;;  %v2708_v35 = vadd.f32 1.0, %v3559_v45 }
 0x871   :  { %v2714_v44 = vadd.f32 1.0, %v3561_v23  ;;  %v3563_v37 = vpop.eup %3562 }
 0x872   :  { %3566 = vrcp.f32 %v2708_v35  ;;  %v3565_v5 = vpop.eup %3564  ;;  %v2721_v48 = vadd.f32 1.0, %v3563_v37 }
 0x873   :  { %3568 = vrcp.f32 %v2714_v44 }
 0x874   :  { %3570 = vrcp.f32 %v2721_v48 }
 0x87c   :  { %v3567_v38 = vpop.eup %3566 }
 0x87d   :  { %v3569_v25 = vpop.eup %3568  ;;  %v2725_v40 = vmul.f32 %v3567_v38, %v3565_v5 }
 0x87e   :  { %v2724_v51 = vmul.f32 %v3569_v25, %v2480_v16  ;;  %v3571_v2 = vpop.eup %3570 }
 0x880   :  { %v2726_v4 = vadd.f32 %v2725_v40, %v2724_v51 }
 0x882   :  { %3572 = vtanh.f32 %v2726_v4 }
 0x88c   :  { %v3573_v10 = vpop.eup %3572 }
 0x88d   :  { %v2728_v7 = vmul.f32 %v3573_v10, %v3571_v2 }
 0x88f   :  { %v2732_v15 = vsel %vm4547_vm0, %v2728_v7, 0.0 }
 0x890   :  { %2733 = vst [vmem:[%s4522_s6 + $0x38] sm:$0xff] %v2732_v15 }
 0x891   :  { %2738 = vsyncpa [#allocation5], 1 }
 0x892   :  { %2739 = vsyncpa [#allocation7], 1 }

</bundles_post_ra>
